<compile_context>
chip_gen: v6e
topology: v6e:2x2x1
jax: 0.10.0
libtpu: 0.0.40
codegen_flags: <defaults>
</compile_context>

<pallas_src>
import functools
import numpy as np

import jax
import jax.numpy as jnp
from jax.experimental import pallas as pl
from jax.experimental.pallas import tpu as pltpu

LEAKY_SLOPE = 0.01              # nn.LeakyReLU default negative_slope
LANE = 128                      # TPU lane width
_VMEM_LIMIT = 32 * 1024 * 1024  # safe scoped-VMEM limit on v5e/v6e/v7x


def _round_up(x, m):
    return (x + m - 1) // m * m


# ----------------------------------------------------------------------------
# Pallas kernels
# ----------------------------------------------------------------------------
def _store_epilogue(o_ref, acc, pool):
    """Bias is already added; apply LeakyReLU, optionally pool over M, store."""
    acc = jnp.where(acc >= 0, acc, LEAKY_SLOPE * acc)
    if pool == "none":
        o_ref[0, :, :] = acc.astype(o_ref.dtype)
    elif pool == "max":
        o_ref[0, :, :] = jnp.max(acc, axis=0, keepdims=True).astype(o_ref.dtype)
    else:  # "avg"
        o_ref[0, :, :] = jnp.mean(acc, axis=0, keepdims=True).astype(o_ref.dtype)


def _im2col_matmul_kernel(x_ref, w_ref, b_ref, o_ref, *, pool):
    """First layer: x already im2col'ed by XLA.

    x : (1, M, 9*Cin)   (Cin tiny, so the im2col bytes are negligible)
    w : (9*Cin, Cout_pad)
    b : (1, Cout_pad)   f32
    o : (1, M, Cout_pad) or (1, 1, Cout_pad) when pooled
    """
    acc = jnp.dot(x_ref[0, :, :], w_ref[...], preferred_element_type=jnp.float32)
    acc = acc + b_ref[...]
    _store_epilogue(o_ref, acc, pool)


def _phase_conv_kernel(x_ref, w_ref, b_ref, o_ref, *, ow, m, pool):
    """Later layers: in-kernel tap extraction + single K-folded matmul.

    x : (1, 6, (OH+1)*OW, C)  row/col-parity slabs, slab index = (kh%2)*3 + kw
    w : (9*C, Cout_pad)
    b : (1, Cout_pad)  f32
    o : (1, M, Cout_pad) or (1, 1, Cout_pad) when pooled
    """
    taps = []
    for kh in range(3):
        for kw in range(3):
            slab = (kh % 2) * 3 + kw
            s = (kh // 2) * ow                      # static: 0 or OW
            taps.append(x_ref[0, slab, s:s + m, :])  # (M, C), contiguous rows
    # 9 pieces of C(=128k) lanes each -> 128-aligned lane concat -> (M, 9*C)
    im2col = jnp.concatenate(taps, axis=-1)
    acc = jnp.dot(im2col, w_ref[...], preferred_element_type=jnp.float32)
    acc = acc + b_ref[...]
    _store_epilogue(o_ref, acc, pool)


# ----------------------------------------------------------------------------
# XLA-side layout glue (fused pad / strided slice / free reshape)
# ----------------------------------------------------------------------------
def _im2col_xla(x, OH, OW):
    """x: (N, H, W, C) -> (N, OH*OW, 9*C).  Used only when C is tiny."""
    N, H, W, C = x.shape
    xp = jnp.pad(x, ((0, 0), (1, max(0, 2 * OH - H)), (1, max(0, 2 * OW - W)),
                     (0, 0)))
    cols = []
    for kh in range(3):
        for kw in range(3):
            t = xp[:, kh:kh + 2 * OH - 1:2, kw:kw + 2 * OW - 1:2, :]
            cols.append(t.reshape(N, OH * OW, C))
    return jnp.concatenate(cols, axis=-1)


def _phase_stack(x, OH, OW):
    """x: (N, H, W, C) -> (N, 6, (OH+1)*OW, C).

    Slab (q, kw) holds xp[:, q::2, kw::2, :] flattened over its leading two
    dims, so tap (kh, kw) == slab[(kh%2)*3 + kw] rows [(kh//2)*OW, .. + OH*OW).
    Total bytes ~1.5x the activation (vs 2.25x for a full im2col).
    """
    N, H, W, C = x.shape
    pb = 2 * OH + 1 - H            # >= 1
    pr = 2 * OW - W                # >= 0
    xp = jnp.pad(x, ((0, 0), (1, pb), (1, pr), (0, 0)))
    slabs = []
    for q in range(2):
        for kw in range(3):
            t = xp[:, q:q + 2 * OH + 1:2, kw:kw + 2 * OW - 1:2, :]  # (N,OH+1,OW,C)
            slabs.append(t.reshape(N, (OH + 1) * OW, C))
    return jnp.stack(slabs, axis=1)


# ----------------------------------------------------------------------------
# One Conv2d(k=3, s=2, p=1) + LeakyReLU layer (pool fused when it is the last)
# ----------------------------------------------------------------------------
def _conv_layer(x, w_mat, b2, *, first, last, max_pooling, compute_dtype):
    N, H, W, C = x.shape
    OH = (H - 1) // 2 + 1
    OW = (W - 1) // 2 + 1
    M = OH * OW
    K, Cout_pad = w_mat.shape
    pool = ("max" if max_pooling else "avg") if last else "none"

    if first:
        assert K == 9 * C, (K, C)
        xin = _im2col_xla(x.astype(compute_dtype), OH, OW)         # (N, M, 9C)
        kern = functools.partial(_im2col_matmul_kernel, pool=pool)
        in_block = pl.BlockSpec((1, M, K), lambda n: (n, 0, 0))
    else:
        assert C % LANE == 0 and K == 9 * C, (K, C)
        xin = _phase_stack(x, OH, OW)                              # (N,6,MP1,C)
        MP1 = (OH + 1) * OW
        kern = functools.partial(_phase_conv_kernel, ow=OW, m=M, pool=pool)
        in_block = pl.BlockSpec((1, 6, MP1, C), lambda n: (n, 0, 0, 0))

    if last:
        out_shape = jax.ShapeDtypeStruct((N, 1, Cout_pad), jnp.float32)
        out_spec = pl.BlockSpec((1, 1, Cout_pad), lambda n: (n, 0, 0))
        out_bytes = N * Cout_pad * 4
    else:
        out_shape = jax.ShapeDtypeStruct((N, M, Cout_pad), compute_dtype)
        out_spec = pl.BlockSpec((1, M, Cout_pad), lambda n: (n, 0, 0))
        out_bytes = N * M * Cout_pad * jnp.dtype(compute_dtype).itemsize

    cost = pl.CostEstimate(
        flops=2 * N * M * K * Cout_pad,
        transcendentals=0,
        bytes_accessed=int(xin.size) * xin.dtype.itemsize
                       + int(w_mat.size) * w_mat.dtype.itemsize
                       + int(b2.size) * 4 + int(out_bytes))

    out = pl.pallas_call(
        kern,
        out_shape=out_shape,
        grid=(N,),
        in_specs=[in_block,
                  pl.BlockSpec((K, Cout_pad), lambda n: (0, 0)),
                  pl.BlockSpec((1, Cout_pad), lambda n: (0, 0))],
        out_specs=out_spec,
        compiler_params=pltpu.CompilerParams(
            dimension_semantics=("parallel",),
            vmem_limit_bytes=_VMEM_LIMIT),
        cost_estimate=cost,
    )(xin, w_mat, b2)

    if last:
        return out                               # (N, 1, Cout_pad) f32, pooled
    return out.reshape(N, OH, OW, Cout_pad)      # free reshape for next layer


# ----------------------------------------------------------------------------
# One-time parameter repacking (hoisted out of the jitted forward)
# ----------------------------------------------------------------------------
def prepare_params(params, *, compute_dtype=jnp.bfloat16):
    """PyTorch (Cout,Cin,3,3)/(Cout,) -> [(w_mat (9*Cin_pad, Cout_pad), b (1, Cout_pad))]."""
    prepared = []
    for li, (w, b) in enumerate(params):
        cout, cin = int(w.shape[0]), int(w.shape[1])
        cout_pad = _round_up(cout, LANE)
        cin_pad = cin if li == 0 else _round_up(cin, LANE)
        w_t = jnp.transpose(w, (2, 3, 1, 0))                       # (3,3,Cin,Cout)
        w_t = jnp.pad(w_t, ((0, 0), (0, 0),
                            (0, cin_pad - cin), (0, cout_pad - cout)))
        w_mat = w_t.reshape(9 * cin_pad, cout_pad).astype(compute_dtype)
        b2 = jnp.pad(b, (0, cout_pad - cout)).reshape(1, cout_pad).astype(jnp.float32)
        prepared.append((w_mat, b2))
    return prepared


# ----------------------------------------------------------------------------
# Full module forward
# ----------------------------------------------------------------------------
@functools.partial(jax.jit,
                   static_argnames=("out_c", "max_pooling", "compute_dtype"))
def gradual_cnn_block(x_nchw, prepared_params, *, out_c, max_pooling=False,
                      compute_dtype=jnp.bfloat16):
    x = jnp.transpose(x_nchw, (0, 2, 3, 1)).astype(jnp.float32)   # NCHW -> NHWC
    n_layers = len(prepared_params)
    for li, (w_mat, b2) in enumerate(prepared_params):
        x = _conv_layer(x, w_mat, b2,
                        first=(li == 0), last=(li == n_layers - 1),
                        max_pooling=max_pooling, compute_dtype=compute_dtype)
    # x: (N, 1, Cout_pad) f32, already pooled; drop padded channels.
    return x[:, 0, :out_c].reshape(-1, out_c)


# ----------------------------------------------------------------------------
# Deterministic parameter init (same shapes as the PyTorch module)
# ----------------------------------------------------------------------------
def init_params(key, in_c, out_c, spatial):
    num_pools = int(np.log2(spatial))
    params = []
    cin = in_c
    for _ in range(num_pools):
        key, kw, kb = jax.random.split(key, 3)
        fan_in = cin * 9
        w = jax.random.normal(kw, (out_c, cin, 3, 3), jnp.float32) / np.sqrt(fan_in)
        b = 0.01 * jax.random.normal(kb, (out_c,), jnp.float32)
        params.append((w, b))
        cin = out_c
    return params


# ----------------------------------------------------------------------------
# Pure-JAX reference for correctness check
# ----------------------------------------------------------------------------
def ref_forward(x_nchw, params, out_c, max_pooling=False):
    y = x_nchw.astype(jnp.float32)
    for (w, b) in params:
        y = jax.lax.conv_general_dilated(
            y, w, window_strides=(2, 2), padding=((1, 1), (1, 1)),
            dimension_numbers=("NCHW", "OIHW", "NCHW"))
        y = y + b[None, :, None, None]
        y = jnp.where(y >= 0, y, LEAKY_SLOPE * y)
    if max_pooling:
        y = jnp.max(y, axis=(2, 3))
    else:
        y = jnp.mean(y, axis=(2, 3))
    return y.reshape(-1, out_c)


if __name__ == "__main__":
    # (N, in_c, out_c, spatial, compute_dtypes, pooling_modes)
    configs = [
        (2, 4, 8, 16, (jnp.float32, jnp.bfloat16), (False, True)),  # 1x1 final
        (2, 4, 8, 12, (jnp.bfloat16,),             (False, True)),  # pool over 2x2
        (4, 3, 8, 32, (jnp.bfloat16,),             (False,)),       # 5 layers, grid=4
    ]
    key = jax.random.PRNGKey(0)
    for (N, in_c, out_c, spatial, dtypes, poolings) in configs:
        key, kx, kp = jax.random.split(key, 3)
        x = jax.random.normal(kx, (N, in_c, spatial, spatial), jnp.float32)
        params = init_params(kp, in_c, out_c, spatial)
        for cdt in dtypes:
            prepared = prepare_params(params, compute_dtype=cdt)
            tol = 2e-2 if cdt == jnp.float32 else 5e-2
            for max_pooling in poolings:
                ref = np.asarray(ref_forward(x, params, out_c,
                                             max_pooling=max_pooling))
                out = gradual_cnn_block(x, prepared, out_c=out_c,
                                        max_pooling=max_pooling,
                                        compute_dtype=cdt)
                out = jax.block_until_ready(out)
                assert out.shape == (N, out_c), out.shape
                np.testing.assert_allclose(np.asarray(out), ref,
                                           rtol=tol, atol=tol)

    print("KERNEL_OK")
</pallas_src>

<mosaic_0001>
module attributes {stable_mosaic.version = 11 : i64} {
  func.func @_im2col_matmul_kernel(%arg0: i32, %arg1: memref<1x64x36xf32, #tpu.memory_space<vmem>>, %arg2: memref<36x128xf32, #tpu.memory_space<vmem>>, %arg3: memref<1x128xf32, #tpu.memory_space<vmem>>, %arg4: memref<1x64x128xf32, #tpu.memory_space<vmem>>) attributes {dimension_semantics = [#tpu.dimension_semantics<parallel>], iteration_bounds = array<i64: 2>, scalar_prefetch = 0 : i64, scratch_operands = 0 : i64, tpu.core_type = #tpu.core_type<tc>, window_params = [{transform_indices = @transform_0, window_bounds = array<i64: 1, 64, 36>}, {pipeline_mode = #tpu.pipeline_mode<synchronous>, transform_indices = @transform_1, window_bounds = array<i64: 36, 128>}, {pipeline_mode = #tpu.pipeline_mode<synchronous>, transform_indices = @transform_2, window_bounds = array<i64: 1, 128>}, {transform_indices = @transform_3, window_bounds = array<i64: 1, 64, 128>}]} {
    %c0 = arith.constant 0 : index
    %c0_0 = arith.constant 0 : index
    %c0_1 = arith.constant 0 : index
    %0 = vector.load %arg1[%c0, %c0_0, %c0_1] : memref<1x64x36xf32, #tpu.memory_space<vmem>>, vector<1x64x36xf32>
    %1 = vector.shape_cast %0 : vector<1x64x36xf32> to vector<64x36xf32>
    %c0_2 = arith.constant 0 : index
    %c0_3 = arith.constant 0 : index
    %2 = vector.load %arg2[%c0_2, %c0_3] : memref<36x128xf32, #tpu.memory_space<vmem>>, vector<36x128xf32>
    %cst = arith.constant dense<0.000000e+00> : vector<64x128xf32>
    %3 = tpu.matmul %1, %2, %cst {dimension_numbers = #tpu.dot_dimension_numbers<[1], [0], [0], [1], [0, 0, 1, 1], [], []>} : vector<64x36xf32>, vector<36x128xf32>, vector<64x128xf32> -> vector<64x128xf32>
    %c0_4 = arith.constant 0 : index
    %c0_5 = arith.constant 0 : index
    %4 = vector.load %arg3[%c0_4, %c0_5] : memref<1x128xf32, #tpu.memory_space<vmem>>, vector<1x128xf32>
    %5 = vector.broadcast %4 : vector<1x128xf32> to vector<64x128xf32>
    %6 = arith.addf %3, %5 : vector<64x128xf32>
    %cst_6 = arith.constant 0.000000e+00 : f32
    %7 = vector.broadcast %cst_6 : f32 to vector<64x128xf32>
    %8 = arith.cmpf oge, %6, %7 : vector<64x128xf32>
    %cst_7 = arith.constant 0.00999999977 : f32
    %9 = vector.broadcast %cst_7 : f32 to vector<64x128xf32>
    %10 = arith.mulf %9, %6 : vector<64x128xf32>
    %11 = arith.select %8, %6, %10 : vector<64x128xi1>, vector<64x128xf32>
    %c0_8 = arith.constant 0 : index
    %c0_9 = arith.constant 0 : index
    %c0_10 = arith.constant 0 : index
    %12 = vector.load %arg4[%c0_8, %c0_9, %c0_10] : memref<1x64x128xf32, #tpu.memory_space<vmem>>, vector<1x64x128xf32>
    %13 = vector.shape_cast %12 : vector<1x64x128xf32> to vector<64x128xf32>
    %14 = vector.shape_cast %11 : vector<64x128xf32> to vector<1x64x128xf32>
    tpu.vector_store %arg4[%c0_8, %c0_9, %c0_10], %14 {strides = array<i32>} : memref<1x64x128xf32, #tpu.memory_space<vmem>>, vector<1x64x128xf32>,
    return
  }
  func.func @transform_0(%arg0: i32) -> (i32, i32, i32) {
    %c0_i32 = arith.constant 0 : i32
    %c0_i32_0 = arith.constant 0 : i32
    %c0_i32_1 = arith.constant 0 : i32
    return %arg0, %c0_i32, %c0_i32_0 : i32, i32, i32
  }
  func.func @transform_1(%arg0: i32) -> (i32, i32) {
    %c0_i32 = arith.constant 0 : i32
    %c0_i32_0 = arith.constant 0 : i32
    %c0_i32_1 = arith.constant 0 : i32
    return %c0_i32, %c0_i32_0 : i32, i32
  }
  func.func @transform_2(%arg0: i32) -> (i32, i32) {
    %c0_i32 = arith.constant 0 : i32
    %c0_i32_0 = arith.constant 0 : i32
    %c0_i32_1 = arith.constant 0 : i32
    return %c0_i32, %c0_i32_0 : i32, i32
  }
  func.func @transform_3(%arg0: i32) -> (i32, i32, i32) {
    %c0_i32 = arith.constant 0 : i32
    %c0_i32_0 = arith.constant 0 : i32
    %c0_i32_1 = arith.constant 0 : i32
    return %arg0, %c0_i32, %c0_i32_0 : i32, i32, i32
  }
}

module attributes {stable_mosaic.version = 11 : i64} {
  func.func @_phase_conv_kernel(%arg0: i32, %arg1: memref<1x6x20x128xf32, #tpu.memory_space<vmem>>, %arg2: memref<1152x128xf32, #tpu.memory_space<vmem>>, %arg3: memref<1x128xf32, #tpu.memory_space<vmem>>, %arg4: memref<1x16x128xf32, #tpu.memory_space<vmem>>) attributes {dimension_semantics = [#tpu.dimension_semantics<parallel>], iteration_bounds = array<i64: 2>, scalar_prefetch = 0 : i64, scratch_operands = 0 : i64, tpu.core_type = #tpu.core_type<tc>, window_params = [{transform_indices = @transform_0, window_bounds = array<i64: 1, 6, 20, 128>}, {pipeline_mode = #tpu.pipeline_mode<synchronous>, transform_indices = @transform_1, window_bounds = array<i64: 1152, 128>}, {pipeline_mode = #tpu.pipeline_mode<synchronous>, transform_indices = @transform_2, window_bounds = array<i64: 1, 128>}, {transform_indices = @transform_3, window_bounds = array<i64: 1, 16, 128>}]} {
    %c0 = arith.constant 0 : index
    %c0_0 = arith.constant 0 : index
    %c0_1 = arith.constant 0 : index
    %c0_2 = arith.constant 0 : index
    %0 = vector.load %arg1[%c0, %c0_0, %c0_1, %c0_2] : memref<1x6x20x128xf32, #tpu.memory_space<vmem>>, vector<1x1x16x128xf32>
    %1 = vector.shape_cast %0 : vector<1x1x16x128xf32> to vector<16x128xf32>
    %c0_3 = arith.constant 0 : index
    %c1 = arith.constant 1 : index
    %c0_4 = arith.constant 0 : index
    %c0_5 = arith.constant 0 : index
    %2 = vector.load %arg1[%c0_3, %c1, %c0_4, %c0_5] : memref<1x6x20x128xf32, #tpu.memory_space<vmem>>, vector<1x1x16x128xf32>
    %3 = vector.shape_cast %2 : vector<1x1x16x128xf32> to vector<16x128xf32>
    %c0_6 = arith.constant 0 : index
    %c2 = arith.constant 2 : index
    %c0_7 = arith.constant 0 : index
    %c0_8 = arith.constant 0 : index
    %4 = vector.load %arg1[%c0_6, %c2, %c0_7, %c0_8] : memref<1x6x20x128xf32, #tpu.memory_space<vmem>>, vector<1x1x16x128xf32>
    %5 = vector.shape_cast %4 : vector<1x1x16x128xf32> to vector<16x128xf32>
    %c0_9 = arith.constant 0 : index
    %c3 = arith.constant 3 : index
    %c0_10 = arith.constant 0 : index
    %c0_11 = arith.constant 0 : index
    %6 = vector.load %arg1[%c0_9, %c3, %c0_10, %c0_11] : memref<1x6x20x128xf32, #tpu.memory_space<vmem>>, vector<1x1x16x128xf32>
    %7 = vector.shape_cast %6 : vector<1x1x16x128xf32> to vector<16x128xf32>
    %c0_12 = arith.constant 0 : index
    %c4 = arith.constant 4 : index
    %c0_13 = arith.constant 0 : index
    %c0_14 = arith.constant 0 : index
    %8 = vector.load %arg1[%c0_12, %c4, %c0_13, %c0_14] : memref<1x6x20x128xf32, #tpu.memory_space<vmem>>, vector<1x1x16x128xf32>
    %9 = vector.shape_cast %8 : vector<1x1x16x128xf32> to vector<16x128xf32>
    %c0_15 = arith.constant 0 : index
    %c5 = arith.constant 5 : index
    %c0_16 = arith.constant 0 : index
    %c0_17 = arith.constant 0 : index
    %10 = vector.load %arg1[%c0_15, %c5, %c0_16, %c0_17] : memref<1x6x20x128xf32, #tpu.memory_space<vmem>>, vector<1x1x16x128xf32>
    %11 = vector.shape_cast %10 : vector<1x1x16x128xf32> to vector<16x128xf32>
    %c0_18 = arith.constant 0 : index
    %c0_19 = arith.constant 0 : index
    %c4_20 = arith.constant 4 : index
    %c0_21 = arith.constant 0 : index
    %12 = vector.load %arg1[%c0_18, %c0_19, %c4_20, %c0_21] : memref<1x6x20x128xf32, #tpu.memory_space<vmem>>, vector<1x1x16x128xf32>
    %13 = vector.shape_cast %12 : vector<1x1x16x128xf32> to vector<16x128xf32>
    %c0_22 = arith.constant 0 : index
    %c1_23 = arith.constant 1 : index
    %c4_24 = arith.constant 4 : index
    %c0_25 = arith.constant 0 : index
    %14 = vector.load %arg1[%c0_22, %c1_23, %c4_24, %c0_25] : memref<1x6x20x128xf32, #tpu.memory_space<vmem>>, vector<1x1x16x128xf32>
    %15 = vector.shape_cast %14 : vector<1x1x16x128xf32> to vector<16x128xf32>
    %c0_26 = arith.constant 0 : index
    %c2_27 = arith.constant 2 : index
    %c4_28 = arith.constant 4 : index
    %c0_29 = arith.constant 0 : index
    %16 = vector.load %arg1[%c0_26, %c2_27, %c4_28, %c0_29] : memref<1x6x20x128xf32, #tpu.memory_space<vmem>>, vector<1x1x16x128xf32>
    %17 = vector.shape_cast %16 : vector<1x1x16x128xf32> to vector<16x128xf32>
    %18 = tpu.concatenate %1, %3, %5, %7, %9, %11, %13, %15, %17 in 1 : vector<16x128xf32>, vector<16x128xf32>, vector<16x128xf32>, vector<16x128xf32>, vector<16x128xf32>, vector<16x128xf32>, vector<16x128xf32>, vector<16x128xf32>, vector<16x128xf32> -> vector<16x1152xf32>
    %c0_30 = arith.constant 0 : index
    %c0_31 = arith.constant 0 : index
    %19 = vector.load %arg2[%c0_30, %c0_31] : memref<1152x128xf32, #tpu.memory_space<vmem>>, vector<1152x128xf32>
    %cst = arith.constant dense<0.000000e+00> : vector<16x128xf32>
    %20 = tpu.matmul %18, %19, %cst {dimension_numbers = #tpu.dot_dimension_numbers<[1], [0], [0], [1], [0, 0, 1, 1], [], []>} : vector<16x1152xf32>, vector<1152x128xf32>, vector<16x128xf32> -> vector<16x128xf32>
    %c0_32 = arith.constant 0 : index
    %c0_33 = arith.constant 0 : index
    %21 = vector.load %arg3[%c0_32, %c0_33] : memref<1x128xf32, #tpu.memory_space<vmem>>, vector<1x128xf32>
    %22 = vector.broadcast %21 : vector<1x128xf32> to vector<16x128xf32>
    %23 = arith.addf %20, %22 : vector<16x128xf32>
    %cst_34 = arith.constant 0.000000e+00 : f32
    %24 = vector.broadcast %cst_34 : f32 to vector<16x128xf32>
    %25 = arith.cmpf oge, %23, %24 : vector<16x128xf32>
    %cst_35 = arith.constant 0.00999999977 : f32
    %26 = vector.broadcast %cst_35 : f32 to vector<16x128xf32>
    %27 = arith.mulf %26, %23 : vector<16x128xf32>
    %28 = arith.select %25, %23, %27 : vector<16x128xi1>, vector<16x128xf32>
    %c0_36 = arith.constant 0 : index
    %c0_37 = arith.constant 0 : index
    %c0_38 = arith.constant 0 : index
    %29 = vector.load %arg4[%c0_36, %c0_37, %c0_38] : memref<1x16x128xf32, #tpu.memory_space<vmem>>, vector<1x16x128xf32>
    %30 = vector.shape_cast %29 : vector<1x16x128xf32> to vector<16x128xf32>
    %31 = vector.shape_cast %28 : vector<16x128xf32> to vector<1x16x128xf32>
    tpu.vector_store %arg4[%c0_36, %c0_37, %c0_38], %31 {strides = array<i32>} : memref<1x16x128xf32, #tpu.memory_space<vmem>>, vector<1x16x128xf32>,
    return
  }
  func.func @transform_0(%arg0: i32) -> (i32, i32, i32, i32) {
    %c0_i32 = arith.constant 0 : i32
    %c0_i32_0 = arith.constant 0 : i32
    %c0_i32_1 = arith.constant 0 : i32
    %c0_i32_2 = arith.constant 0 : i32
    return %arg0, %c0_i32, %c0_i32_0, %c0_i32_1 : i32, i32, i32, i32
  }
  func.func @transform_1(%arg0: i32) -> (i32, i32) {
    %c0_i32 = arith.constant 0 : i32
    %c0_i32_0 = arith.constant 0 : i32
    %c0_i32_1 = arith.constant 0 : i32
    return %c0_i32, %c0_i32_0 : i32, i32
  }
  func.func @transform_2(%arg0: i32) -> (i32, i32) {
    %c0_i32 = arith.constant 0 : i32
    %c0_i32_0 = arith.constant 0 : i32
    %c0_i32_1 = arith.constant 0 : i32
    return %c0_i32, %c0_i32_0 : i32, i32
  }
  func.func @transform_3(%arg0: i32) -> (i32, i32, i32) {
    %c0_i32 = arith.constant 0 : i32
    %c0_i32_0 = arith.constant 0 : i32
    %c0_i32_1 = arith.constant 0 : i32
    return %arg0, %c0_i32, %c0_i32_0 : i32, i32, i32
  }
}

module attributes {stable_mosaic.version = 11 : i64} {
  func.func @_phase_conv_kernel(%arg0: i32, %arg1: memref<1x6x6x128xf32, #tpu.memory_space<vmem>>, %arg2: memref<1152x128xf32, #tpu.memory_space<vmem>>, %arg3: memref<1x128xf32, #tpu.memory_space<vmem>>, %arg4: memref<1x4x128xf32, #tpu.memory_space<vmem>>) attributes {dimension_semantics = [#tpu.dimension_semantics<parallel>], iteration_bounds = array<i64: 2>, scalar_prefetch = 0 : i64, scratch_operands = 0 : i64, tpu.core_type = #tpu.core_type<tc>, window_params = [{transform_indices = @transform_0, window_bounds = array<i64: 1, 6, 6, 128>}, {pipeline_mode = #tpu.pipeline_mode<synchronous>, transform_indices = @transform_1, window_bounds = array<i64: 1152, 128>}, {pipeline_mode = #tpu.pipeline_mode<synchronous>, transform_indices = @transform_2, window_bounds = array<i64: 1, 128>}, {transform_indices = @transform_3, window_bounds = array<i64: 1, 4, 128>}]} {
    %c0 = arith.constant 0 : index
    %c0_0 = arith.constant 0 : index
    %c0_1 = arith.constant 0 : index
    %c0_2 = arith.constant 0 : index
    %0 = vector.load %arg1[%c0, %c0_0, %c0_1, %c0_2] : memref<1x6x6x128xf32, #tpu.memory_space<vmem>>, vector<1x1x4x128xf32>
    %1 = vector.shape_cast %0 : vector<1x1x4x128xf32> to vector<4x128xf32>
    %c0_3 = arith.constant 0 : index
    %c1 = arith.constant 1 : index
    %c0_4 = arith.constant 0 : index
    %c0_5 = arith.constant 0 : index
    %2 = vector.load %arg1[%c0_3, %c1, %c0_4, %c0_5] : memref<1x6x6x128xf32, #tpu.memory_space<vmem>>, vector<1x1x4x128xf32>
    %3 = vector.shape_cast %2 : vector<1x1x4x128xf32> to vector<4x128xf32>
    %c0_6 = arith.constant 0 : index
    %c2 = arith.constant 2 : index
    %c0_7 = arith.constant 0 : index
    %c0_8 = arith.constant 0 : index
    %4 = vector.load %arg1[%c0_6, %c2, %c0_7, %c0_8] : memref<1x6x6x128xf32, #tpu.memory_space<vmem>>, vector<1x1x4x128xf32>
    %5 = vector.shape_cast %4 : vector<1x1x4x128xf32> to vector<4x128xf32>
    %c0_9 = arith.constant 0 : index
    %c3 = arith.constant 3 : index
    %c0_10 = arith.constant 0 : index
    %c0_11 = arith.constant 0 : index
    %6 = vector.load %arg1[%c0_9, %c3, %c0_10, %c0_11] : memref<1x6x6x128xf32, #tpu.memory_space<vmem>>, vector<1x1x4x128xf32>
    %7 = vector.shape_cast %6 : vector<1x1x4x128xf32> to vector<4x128xf32>
    %c0_12 = arith.constant 0 : index
    %c4 = arith.constant 4 : index
    %c0_13 = arith.constant 0 : index
    %c0_14 = arith.constant 0 : index
    %8 = vector.load %arg1[%c0_12, %c4, %c0_13, %c0_14] : memref<1x6x6x128xf32, #tpu.memory_space<vmem>>, vector<1x1x4x128xf32>
    %9 = vector.shape_cast %8 : vector<1x1x4x128xf32> to vector<4x128xf32>
    %c0_15 = arith.constant 0 : index
    %c5 = arith.constant 5 : index
    %c0_16 = arith.constant 0 : index
    %c0_17 = arith.constant 0 : index
    %10 = vector.load %arg1[%c0_15, %c5, %c0_16, %c0_17] : memref<1x6x6x128xf32, #tpu.memory_space<vmem>>, vector<1x1x4x128xf32>
    %11 = vector.shape_cast %10 : vector<1x1x4x128xf32> to vector<4x128xf32>
    %c0_18 = arith.constant 0 : index
    %c0_19 = arith.constant 0 : index
    %c2_20 = arith.constant 2 : index
    %c0_21 = arith.constant 0 : index
    %12 = vector.load %arg1[%c0_18, %c0_19, %c2_20, %c0_21] : memref<1x6x6x128xf32, #tpu.memory_space<vmem>>, vector<1x1x4x128xf32>
    %13 = vector.shape_cast %12 : vector<1x1x4x128xf32> to vector<4x128xf32>
    %c0_22 = arith.constant 0 : index
    %c1_23 = arith.constant 1 : index
    %c2_24 = arith.constant 2 : index
    %c0_25 = arith.constant 0 : index
    %14 = vector.load %arg1[%c0_22, %c1_23, %c2_24, %c0_25] : memref<1x6x6x128xf32, #tpu.memory_space<vmem>>, vector<1x1x4x128xf32>
    %15 = vector.shape_cast %14 : vector<1x1x4x128xf32> to vector<4x128xf32>
    %c0_26 = arith.constant 0 : index
    %c2_27 = arith.constant 2 : index
    %c2_28 = arith.constant 2 : index
    %c0_29 = arith.constant 0 : index
    %16 = vector.load %arg1[%c0_26, %c2_27, %c2_28, %c0_29] : memref<1x6x6x128xf32, #tpu.memory_space<vmem>>, vector<1x1x4x128xf32>
    %17 = vector.shape_cast %16 : vector<1x1x4x128xf32> to vector<4x128xf32>
    %18 = tpu.concatenate %1, %3, %5, %7, %9, %11, %13, %15, %17 in 1 : vector<4x128xf32>, vector<4x128xf32>, vector<4x128xf32>, vector<4x128xf32>, vector<4x128xf32>, vector<4x128xf32>, vector<4x128xf32>, vector<4x128xf32>, vector<4x128xf32> -> vector<4x1152xf32>
    %c0_30 = arith.constant 0 : index
    %c0_31 = arith.constant 0 : index
    %19 = vector.load %arg2[%c0_30, %c0_31] : memref<1152x128xf32, #tpu.memory_space<vmem>>, vector<1152x128xf32>
    %cst = arith.constant dense<0.000000e+00> : vector<4x128xf32>
    %20 = tpu.matmul %18, %19, %cst {dimension_numbers = #tpu.dot_dimension_numbers<[1], [0], [0], [1], [0, 0, 1, 1], [], []>} : vector<4x1152xf32>, vector<1152x128xf32>, vector<4x128xf32> -> vector<4x128xf32>
    %c0_32 = arith.constant 0 : index
    %c0_33 = arith.constant 0 : index
    %21 = vector.load %arg3[%c0_32, %c0_33] : memref<1x128xf32, #tpu.memory_space<vmem>>, vector<1x128xf32>
    %22 = vector.broadcast %21 : vector<1x128xf32> to vector<4x128xf32>
    %23 = arith.addf %20, %22 : vector<4x128xf32>
    %cst_34 = arith.constant 0.000000e+00 : f32
    %24 = vector.broadcast %cst_34 : f32 to vector<4x128xf32>
    %25 = arith.cmpf oge, %23, %24 : vector<4x128xf32>
    %cst_35 = arith.constant 0.00999999977 : f32
    %26 = vector.broadcast %cst_35 : f32 to vector<4x128xf32>
    %27 = arith.mulf %26, %23 : vector<4x128xf32>
    %28 = arith.select %25, %23, %27 : vector<4x128xi1>, vector<4x128xf32>
    %c0_36 = arith.constant 0 : index
    %c0_37 = arith.constant 0 : index
    %c0_38 = arith.constant 0 : index
    %29 = vector.load %arg4[%c0_36, %c0_37, %c0_38] : memref<1x4x128xf32, #tpu.memory_space<vmem>>, vector<1x4x128xf32>
    %30 = vector.shape_cast %29 : vector<1x4x128xf32> to vector<4x128xf32>
    %31 = vector.shape_cast %28 : vector<4x128xf32> to vector<1x4x128xf32>
    tpu.vector_store %arg4[%c0_36, %c0_37, %c0_38], %31 {strides = array<i32>} : memref<1x4x128xf32, #tpu.memory_space<vmem>>, vector<1x4x128xf32>,
    return
  }
  func.func @transform_0(%arg0: i32) -> (i32, i32, i32, i32) {
    %c0_i32 = arith.constant 0 : i32
    %c0_i32_0 = arith.constant 0 : i32
    %c0_i32_1 = arith.constant 0 : i32
    %c0_i32_2 = arith.constant 0 : i32
    return %arg0, %c0_i32, %c0_i32_0, %c0_i32_1 : i32, i32, i32, i32
  }
  func.func @transform_1(%arg0: i32) -> (i32, i32) {
    %c0_i32 = arith.constant 0 : i32
    %c0_i32_0 = arith.constant 0 : i32
    %c0_i32_1 = arith.constant 0 : i32
    return %c0_i32, %c0_i32_0 : i32, i32
  }
  func.func @transform_2(%arg0: i32) -> (i32, i32) {
    %c0_i32 = arith.constant 0 : i32
    %c0_i32_0 = arith.constant 0 : i32
    %c0_i32_1 = arith.constant 0 : i32
    return %c0_i32, %c0_i32_0 : i32, i32
  }
  func.func @transform_3(%arg0: i32) -> (i32, i32, i32) {
    %c0_i32 = arith.constant 0 : i32
    %c0_i32_0 = arith.constant 0 : i32
    %c0_i32_1 = arith.constant 0 : i32
    return %arg0, %c0_i32, %c0_i32_0 : i32, i32, i32
  }
}

module attributes {stable_mosaic.version = 11 : i64} {
  func.func @_phase_conv_kernel(%arg0: i32, %arg1: memref<1x6x2x128xf32, #tpu.memory_space<vmem>>, %arg2: memref<1152x128xf32, #tpu.memory_space<vmem>>, %arg3: memref<1x128xf32, #tpu.memory_space<vmem>>, %arg4: memref<1x1x128xf32, #tpu.memory_space<vmem>>) attributes {dimension_semantics = [#tpu.dimension_semantics<parallel>], iteration_bounds = array<i64: 2>, scalar_prefetch = 0 : i64, scratch_operands = 0 : i64, tpu.core_type = #tpu.core_type<tc>, window_params = [{transform_indices = @transform_0, window_bounds = array<i64: 1, 6, 2, 128>}, {pipeline_mode = #tpu.pipeline_mode<synchronous>, transform_indices = @transform_1, window_bounds = array<i64: 1152, 128>}, {pipeline_mode = #tpu.pipeline_mode<synchronous>, transform_indices = @transform_2, window_bounds = array<i64: 1, 128>}, {transform_indices = @transform_3, window_bounds = array<i64: 1, 1, 128>}]} {
    %c0 = arith.constant 0 : index
    %c0_0 = arith.constant 0 : index
    %c0_1 = arith.constant 0 : index
    %c0_2 = arith.constant 0 : index
    %0 = vector.load %arg1[%c0, %c0_0, %c0_1, %c0_2] : memref<1x6x2x128xf32, #tpu.memory_space<vmem>>, vector<1x1x1x128xf32>
    %1 = vector.shape_cast %0 : vector<1x1x1x128xf32> to vector<1x128xf32>
    %c0_3 = arith.constant 0 : index
    %c1 = arith.constant 1 : index
    %c0_4 = arith.constant 0 : index
    %c0_5 = arith.constant 0 : index
    %2 = vector.load %arg1[%c0_3, %c1, %c0_4, %c0_5] : memref<1x6x2x128xf32, #tpu.memory_space<vmem>>, vector<1x1x1x128xf32>
    %3 = vector.shape_cast %2 : vector<1x1x1x128xf32> to vector<1x128xf32>
    %c0_6 = arith.constant 0 : index
    %c2 = arith.constant 2 : index
    %c0_7 = arith.constant 0 : index
    %c0_8 = arith.constant 0 : index
    %4 = vector.load %arg1[%c0_6, %c2, %c0_7, %c0_8] : memref<1x6x2x128xf32, #tpu.memory_space<vmem>>, vector<1x1x1x128xf32>
    %5 = vector.shape_cast %4 : vector<1x1x1x128xf32> to vector<1x128xf32>
    %c0_9 = arith.constant 0 : index
    %c3 = arith.constant 3 : index
    %c0_10 = arith.constant 0 : index
    %c0_11 = arith.constant 0 : index
    %6 = vector.load %arg1[%c0_9, %c3, %c0_10, %c0_11] : memref<1x6x2x128xf32, #tpu.memory_space<vmem>>, vector<1x1x1x128xf32>
    %7 = vector.shape_cast %6 : vector<1x1x1x128xf32> to vector<1x128xf32>
    %c0_12 = arith.constant 0 : index
    %c4 = arith.constant 4 : index
    %c0_13 = arith.constant 0 : index
    %c0_14 = arith.constant 0 : index
    %8 = vector.load %arg1[%c0_12, %c4, %c0_13, %c0_14] : memref<1x6x2x128xf32, #tpu.memory_space<vmem>>, vector<1x1x1x128xf32>
    %9 = vector.shape_cast %8 : vector<1x1x1x128xf32> to vector<1x128xf32>
    %c0_15 = arith.constant 0 : index
    %c5 = arith.constant 5 : index
    %c0_16 = arith.constant 0 : index
    %c0_17 = arith.constant 0 : index
    %10 = vector.load %arg1[%c0_15, %c5, %c0_16, %c0_17] : memref<1x6x2x128xf32, #tpu.memory_space<vmem>>, vector<1x1x1x128xf32>
    %11 = vector.shape_cast %10 : vector<1x1x1x128xf32> to vector<1x128xf32>
    %c0_18 = arith.constant 0 : index
    %c0_19 = arith.constant 0 : index
    %c1_20 = arith.constant 1 : index
    %c0_21 = arith.constant 0 : index
    %12 = vector.load %arg1[%c0_18, %c0_19, %c1_20, %c0_21] : memref<1x6x2x128xf32, #tpu.memory_space<vmem>>, vector<1x1x1x128xf32>
    %13 = vector.shape_cast %12 : vector<1x1x1x128xf32> to vector<1x128xf32>
    %c0_22 = arith.constant 0 : index
    %c1_23 = arith.constant 1 : index
    %c1_24 = arith.constant 1 : index
    %c0_25 = arith.constant 0 : index
    %14 = vector.load %arg1[%c0_22, %c1_23, %c1_24, %c0_25] : memref<1x6x2x128xf32, #tpu.memory_space<vmem>>, vector<1x1x1x128xf32>
    %15 = vector.shape_cast %14 : vector<1x1x1x128xf32> to vector<1x128xf32>
    %c0_26 = arith.constant 0 : index
    %c2_27 = arith.constant 2 : index
    %c1_28 = arith.constant 1 : index
    %c0_29 = arith.constant 0 : index
    %16 = vector.load %arg1[%c0_26, %c2_27, %c1_28, %c0_29] : memref<1x6x2x128xf32, #tpu.memory_space<vmem>>, vector<1x1x1x128xf32>
    %17 = vector.shape_cast %16 : vector<1x1x1x128xf32> to vector<1x128xf32>
    %18 = tpu.concatenate %1, %3, %5, %7, %9, %11, %13, %15, %17 in 1 : vector<1x128xf32>, vector<1x128xf32>, vector<1x128xf32>, vector<1x128xf32>, vector<1x128xf32>, vector<1x128xf32>, vector<1x128xf32>, vector<1x128xf32>, vector<1x128xf32> -> vector<1x1152xf32>
    %c0_30 = arith.constant 0 : index
    %c0_31 = arith.constant 0 : index
    %19 = vector.load %arg2[%c0_30, %c0_31] : memref<1152x128xf32, #tpu.memory_space<vmem>>, vector<1152x128xf32>
    %cst = arith.constant dense<0.000000e+00> : vector<1x128xf32>
    %20 = tpu.matmul %18, %19, %cst {dimension_numbers = #tpu.dot_dimension_numbers<[1], [0], [0], [1], [0, 0, 1, 1], [], []>} : vector<1x1152xf32>, vector<1152x128xf32>, vector<1x128xf32> -> vector<1x128xf32>
    %c0_32 = arith.constant 0 : index
    %c0_33 = arith.constant 0 : index
    %21 = vector.load %arg3[%c0_32, %c0_33] : memref<1x128xf32, #tpu.memory_space<vmem>>, vector<1x128xf32>
    %22 = arith.addf %20, %21 : vector<1x128xf32>
    %cst_34 = arith.constant 0.000000e+00 : f32
    %23 = vector.broadcast %cst_34 : f32 to vector<1x128xf32>
    %24 = arith.cmpf oge, %22, %23 : vector<1x128xf32>
    %cst_35 = arith.constant 0.00999999977 : f32
    %25 = vector.broadcast %cst_35 : f32 to vector<1x128xf32>
    %26 = arith.mulf %25, %22 : vector<1x128xf32>
    %27 = arith.select %24, %22, %26 : vector<1x128xi1>, vector<1x128xf32>
    %cst_36 = arith.constant dense<0.000000e+00> : vector<128xf32>
    %28 = vector.multi_reduction <add>, %27, %cst_36 [0] : vector<1x128xf32> to vector<128xf32>
    %29 = vector.shape_cast %28 : vector<128xf32> to vector<1x128xf32>
    %cst_37 = arith.constant 1.000000e+00 : f32
    %30 = vector.broadcast %cst_37 : f32 to vector<1x128xf32>
    %31 = arith.divf %29, %30 : vector<1x128xf32>
    %c0_38 = arith.constant 0 : index
    %c0_39 = arith.constant 0 : index
    %c0_40 = arith.constant 0 : index
    %32 = vector.load %arg4[%c0_38, %c0_39, %c0_40] : memref<1x1x128xf32, #tpu.memory_space<vmem>>, vector<1x1x128xf32>
    %33 = vector.shape_cast %32 : vector<1x1x128xf32> to vector<1x128xf32>
    %34 = vector.shape_cast %31 : vector<1x128xf32> to vector<1x1x128xf32>
    tpu.vector_store %arg4[%c0_38, %c0_39, %c0_40], %34 {strides = array<i32>} : memref<1x1x128xf32, #tpu.memory_space<vmem>>, vector<1x1x128xf32>,
    return
  }
  func.func @transform_0(%arg0: i32) -> (i32, i32, i32, i32) {
    %c0_i32 = arith.constant 0 : i32
    %c0_i32_0 = arith.constant 0 : i32
    %c0_i32_1 = arith.constant 0 : i32
    %c0_i32_2 = arith.constant 0 : i32
    return %arg0, %c0_i32, %c0_i32_0, %c0_i32_1 : i32, i32, i32, i32
  }
  func.func @transform_1(%arg0: i32) -> (i32, i32) {
    %c0_i32 = arith.constant 0 : i32
    %c0_i32_0 = arith.constant 0 : i32
    %c0_i32_1 = arith.constant 0 : i32
    return %c0_i32, %c0_i32_0 : i32, i32
  }
  func.func @transform_2(%arg0: i32) -> (i32, i32) {
    %c0_i32 = arith.constant 0 : i32
    %c0_i32_0 = arith.constant 0 : i32
    %c0_i32_1 = arith.constant 0 : i32
    return %c0_i32, %c0_i32_0 : i32, i32
  }
  func.func @transform_3(%arg0: i32) -> (i32, i32, i32) {
    %c0_i32 = arith.constant 0 : i32
    %c0_i32_0 = arith.constant 0 : i32
    %c0_i32_1 = arith.constant 0 : i32
    return %arg0, %c0_i32, %c0_i32_0 : i32, i32, i32
  }
}

</mosaic_0001>

<bundles_post_ra>
// kernel: gradual_cnn_block.4
= control target key start
LH: loop header
LB: loop body
LE: loop exit
PB: predicated region body
PF: predicated region fallthrough
CT: control target
= control target key end

     0   :  { %s516_s12 = smov 0   ;;  %s576_s0 = inlined_call_operand.vmem [shape: f32[2,64,36], index: 0, kind: input, shape index: {}]   ;;  %s577_s1 = inlined_call_operand.vmem [shape: f32[36,128], index: 1, kind: input, shape index: {}]   ;;  %s578_s2 = inlined_call_operand.vmem [shape: f32[1,128], index: 2, kind: input, shape index: {}]   ;;  %s579_s3 = inlined_call_operand.vmem [shape: f32[2,64,128], index: 3, kind: output, shape index: {}]  }
   0x1 LB: > { %s412_s13 = sadd.s32 4294967295, %s494_s12   ;;  %p416_p0 = scmp.ge.s32.totalorder %s494_s12, 1  ;;  %s494_s12 = sphi %s516_s12, %s13_s12  }
   0x2   : > { %p137_p1 = scmp.lt.s32.totalorder %s494_s12, 3 }
   0x4   : > { %p138_p2 = pnand %p416_p0, %p137_p1 }
   0x5   : > { %p161_p3 = scmp.lt.s32.totalorder (!%p138_p2), %s412_s13, 1 }
   0x6   : > { %141 = sbr.rel (%p138_p2) target bundleno = 230 (0xe6), region = 32 }
   0xb   : > { %v183_v0 = vld [vmem:[%s577_s1 + $0x20] sm:$0xf]  ;;  %vm216_vm0 = vcmask 1043456   ;;  %v182_v1 = vld [vmem:[%s577_s1 + $0x18] sm:$0xff]  ;;  %v181_v2 = vld [vmem:[%s577_s1 + $0x10] sm:$0xff]  ;;  %s581_s13 = smov (!%p161_p3, %s412_s13), 1 }
   0xc   : > { %448 = vmatprep.subr.msk.mxu0 %vm216_vm0, %v183_v0  ;;  %470 = vmatprep.subr.msk.mxu1 %vm216_vm0, %v183_v0  ;;  %v180_v3 = vld [vmem:[%s577_s1 + $0x8] sm:$0xff]  ;;  %s433_s22 = sshll.u32 %s581_s13, 6  ;;  %v179_v4 = vld [vmem:[%s577_s1] sm:$0xff]  ;;  %vm191_vm1 = vcmask 293888  }
   0xd   : > { %449 = vmatpush3.msk.msra.mxu0 %vm216_vm0, %v183_v0  ;;  %475 = vmatpush3.msk.msra.mxu1 %vm216_vm0, %v183_v0  ;;  %s165_s25 = scalar_lea.vmem %s576_s0, %s433_s22  ;;  %v421_v13 = vld [vmem:[%s578_s2] ss:$0 sm:$0xff]  ;;  %s563_s5 = scalar_lea.vmem %s579_s3, %s433_s22 }
   0xe   : > { %450 = vmatprep.subr.mxu0 %v182_v1  ;;  %471 = vmatprep.subr.mxu1 %v182_v1  ;;  %v171_v5 = vld [vmem:[%s165_s25] sm:$0xff]  ;;  %v172_v7 = vld [vmem:[%s165_s25 + $0x8] sm:$0xff]  ;;  %v173_v9 = vld [vmem:[%s165_s25 + $0x10] sm:$0xff] }
   0xf   : > { %451 = vmatpush3.msra.mxu0 %v182_v1  ;;  %476 = vmatpush3.msra.mxu1 %v182_v1  ;;  %v175_v6 = vld [vmem:[%s165_s25 + $0x20] sm:$0xff]  ;;  %v176_v8 = vld [vmem:[%s165_s25 + $0x28] sm:$0xff]  ;;  %v177_v10 = vld [vmem:[%s165_s25 + $0x30] sm:$0xff] }
  0x10   : > { %452 = vmatprep.subr.mxu0 %v181_v2  ;;  %472 = vmatprep.subr.mxu1 %v181_v2  ;;  %v174_v11 = vld [vmem:[%s165_s25 + $0x18] sm:$0xff] }
  0x11   : > { %453 = vmatpush3.msra.mxu0 %v181_v2  ;;  %477 = vmatpush3.msra.mxu1 %v181_v2  ;;  %v178_v12 = vld [vmem:[%s165_s25 + $0x38] sm:$0xff] }
  0x12   : > { %454 = vmatprep.subr.mxu0 %v180_v3  ;;  %473 = vmatprep.subr.mxu1 %v180_v3 }
  0x13   : > { %455 = vmatpush3.msra.mxu0 %v180_v3  ;;  %478 = vmatpush3.msra.mxu1 %v180_v3 }
  0x14   : > { %456 = vmatprep.subr.mxu0 %v179_v4  ;;  %474 = vmatprep.subr.mxu1 %v179_v4 }
  0x15   : > { %457 = vmatpush3.msra.mxu0 %v179_v4  ;;  %479 = vmatpush3.msra.mxu1 %v179_v4 }
  0x16   : > { %458 = vmatprep.mubr.msk.f32.mxu0 %vm191_vm1, %v171_v5  ;;  %464 = vmatprep.mubr.msk.f32.mxu1 %vm191_vm1, %v175_v6 }
  0x17   : > { %459 = vmatmul.mubr.msk.f32.vlgmr.msra.gmra.mxu0 %vm191_vm1, %v172_v7  ;;  %465 = vmatmul.mubr.msk.f32.vlgmr.msra.gmra.mxu1 %vm191_vm1, %v176_v8 }
  0x18   : > { %461 = vmatprep.mubr.msk.f32.mxu0 %vm191_vm1, %v173_v9  ;;  %467 = vmatprep.mubr.msk.f32.mxu1 %vm191_vm1, %v177_v10 }
  0x1b   : > { %462 = vmatmul.mubr.msk.f32.gmra.mxu0 %vm191_vm1, %v174_v11  ;;  %468 = vmatmul.mubr.msk.f32.gmra.mxu1 %vm191_vm1, %v178_v12 }
  0xd7   : > { %v460_v14 = vpop.f32.mrf.mxu0  ;;  %v466_v15 = vpop.f32.mrf.mxu1 }
  0xd8   : > { %v292_v16 = vadd.f32 %v460_v14, %v421_v13  ;;  %v312_v17 = vadd.f32 %v466_v15, %v421_v13 }
  0xd9   : > { %v286_v18 = vpop.f32.mrf.mxu0  ;;  %v306_v19 = vpop.f32.mrf.mxu1 }
  0xda   : > { %vm326_vm2 = vcmp.ge.f32.partialorder %v292_v16, 0.0  ;;  %v334_v20 = vmul.f32 0.01, %v292_v16  ;;  %vm330_vm3 = vcmp.ge.f32.partialorder %v312_v17, 0.0  ;;  %v338_v21 = vmul.f32 0.01, %v312_v17 }
  0xdb   : > { %v287_v22 = vadd.f32 %v421_v13, %v286_v18  ;;  %v307_v23 = vadd.f32 %v421_v13, %v306_v19  ;;  %v463_v24 = vpop.f32.mrf.mxu0  ;;  %v469_v25 = vpop.f32.mrf.mxu1 }
  0xdc   : > { %v342_v26 = vsel %vm326_vm2, %v292_v16, %v334_v20  ;;  %v346_v27 = vsel %vm330_vm3, %v312_v17, %v338_v21  ;;  %v302_v28 = vadd.f32 %v463_v24, %v421_v13  ;;  %v322_v29 = vadd.f32 %v469_v25, %v421_v13 }
  0xdd   : > { %350 = vst [vmem:[%s563_s5 + $0x8] sm:$0xff] %v342_v26  ;;  %354 = vst [vmem:[%s563_s5 + $0x28] sm:$0xff] %v346_v27  ;;  %vm325_vm4 = vcmp.ge.f32.partialorder %v287_v22, 0.0  ;;  %v333_v30 = vmul.f32 0.01, %v287_v22  ;;  %vm329_vm5 = vcmp.ge.f32.partialorder %v307_v23, 0.0  ;;  %v296_v32 = vpop.f32.mrf.mxu0  ;;  %v316_v33 = vpop.f32.mrf.mxu1 }
  0xde   : > { %v337_v31 = vmul.f32 0.01, %v307_v23  ;;  %vm328_vm6 = vcmp.ge.f32.partialorder %v302_v28, 0.0  ;;  %v336_v34 = vmul.f32 0.01, %v302_v28  ;;  %vm332_vm7 = vcmp.ge.f32.partialorder %v322_v29, 0.0 }
  0xdf   : > { %v340_v35 = vmul.f32 0.01, %v322_v29  ;;  %v341_v36 = vsel %vm325_vm4, %v287_v22, %v333_v30  ;;  %v297_v38 = vadd.f32 %v421_v13, %v296_v32  ;;  %v317_v39 = vadd.f32 %v421_v13, %v316_v33 }
  0xe0   : > { %v345_v37 = vsel %vm329_vm5, %v307_v23, %v337_v31  ;;  %349 = vst [vmem:[%s563_s5] sm:$0xff] %v341_v36  ;;  %v344_v40 = vsel %vm328_vm6, %v302_v28, %v336_v34 }
  0xe1   : > { %353 = vst [vmem:[%s563_s5 + $0x20] sm:$0xff] %v345_v37  ;;  %v348_v41 = vsel %vm332_vm7, %v322_v29, %v340_v35  ;;  %352 = vst [vmem:[%s563_s5 + $0x18] sm:$0xff] %v344_v40  ;;  %vm327_vm8 = vcmp.ge.f32.partialorder %v297_v38, 0.0  ;;  %v335_v42 = vmul.f32 0.01, %v297_v38  ;;  %vm331_vm9 = vcmp.ge.f32.partialorder %v317_v39, 0.0 }
  0xe2   : > { %356 = vst [vmem:[%s563_s5 + $0x38] sm:$0xff] %v348_v41  ;;  %v339_v43 = vmul.f32 0.01, %v317_v39 }
  0xe3   : > { %v343_v44 = vsel %vm327_vm8, %v297_v38, %v335_v42 }
  0xe4   : > { %v347_v45 = vsel %vm331_vm9, %v317_v39, %v339_v43  ;;  %351 = vst [vmem:[%s563_s5 + $0x10] sm:$0xff] %v343_v44 }
  0xe5   : > { %355 = vst [vmem:[%s563_s5 + $0x30] sm:$0xff] %v347_v45 }
  0xe6 PF: > { %s13_s12 = sadd.s32 1, %s494_s12  }
  0xe7   : > { %p10_p4 = scmp.ge.s32.totalorder %s13_s12, 4  }
  0xe9   :  { %12 = sbr.rel (!%p10_p4) target bundleno = 1 (0x1), region = 62 }

// kernel: gradual_cnn_block.5
= control target key start
LH: loop header
LB: loop body
LE: loop exit
PB: predicated region body
PF: predicated region fallthrough
CT: control target
= control target key end

     0   :  { %s1051_s12 = smov 0   ;;  %s1537_s0 = inlined_call_operand.vmem [shape: f32[2,6,20,128], index: 0, kind: input, shape index: {}]   ;;  %s1538_s1 = inlined_call_operand.vmem [shape: f32[1152,128], index: 1, kind: input, shape index: {}]   ;;  %s1539_s2 = inlined_call_operand.vmem [shape: f32[1,128], index: 2, kind: input, shape index: {}]   ;;  %s1540_s3 = inlined_call_operand.vmem [shape: f32[2,16,128], index: 3, kind: output, shape index: {}]  }
   0x1 LB: > { %s783_s13 = sadd.s32 4294967295, %s1029_s12   ;;  %p787_p0 = scmp.ge.s32.totalorder %s1029_s12, 1  ;;  %s1029_s12 = sphi %s1051_s12, %s13_s12  }
   0x2   : > { %p137_p1 = scmp.lt.s32.totalorder %s1029_s12, 3 }
   0x4   : > { %p138_p2 = pnand %p787_p0, %p137_p1 }
   0x5   : > { %p1154_p3 = scmp.lt.s32.totalorder (!%p138_p2), %s783_s13, 1 }
   0x6   : > { %141 = sbr.rel (%p138_p2) target bundleno = 315 (0x13b), region = 32 }
   0xb   : > { %v225_v0 = vld [vmem:[%s1538_s1 + $0xf8] sm:$0xff]  ;;  %v224_v2 = vld [vmem:[%s1538_s1 + $0xf0] sm:$0xff]  ;;  %v223_v6 = vld [vmem:[%s1538_s1 + $0xe8] sm:$0xff]  ;;  %s1543_s13 = smov (!%p1154_p3, %s783_s13), 1 }
   0xc   : > { %v209_v1 = vld [vmem:[%s1538_s1 + $0x78] sm:$0xff]  ;;  %809 = vmatprep.subr.mxu0 %v225_v0  ;;  %v208_v4 = vld [vmem:[%s1538_s1 + $0x70] sm:$0xff]  ;;  %v207_v8 = vld [vmem:[%s1538_s1 + $0x68] sm:$0xff]  ;;  %s1014_s7 = smul.u32 144, %s1543_s13  ;;  %s808_s15 = sshll.u32 %s1543_s13, 4 }
   0xd   : > { %v257_v3 = vld [vmem:[%s1538_s1 + $0x1f8] sm:$0xff]  ;;  %810 = vmatpush3.msra.mxu0 %v209_v1  ;;  %v256_v7 = vld [vmem:[%s1538_s1 + $0x1f0] sm:$0xff]  ;;  %v255_v10 = vld [vmem:[%s1538_s1 + $0x1e8] sm:$0xff]  ;;  %s170_s18 = scalar_lea.vmem %s1540_s3, %s808_s15 }
   0xe   : > { %v241_v5 = vld [vmem:[%s1538_s1 + $0x178] sm:$0xff]  ;;  %847 = vmatprep.subr.mxu1 %v257_v3  ;;  %811 = vmatprep.subr.mxu0 %v224_v2  ;;  %v240_v9 = vld [vmem:[%s1538_s1 + $0x170] sm:$0xff]  ;;  %v222_v11 = vld [vmem:[%s1538_s1 + $0xe0] sm:$0xff]  ;;  %s1240_s28 = scalar_lea.vmem %s1537_s0, %s1014_s7 }
   0xf   : > { %848 = vmatpush3.msra.mxu1 %v241_v5  ;;  %812 = vmatpush3.msra.mxu0 %v208_v4  ;;  %v239_v12 = vld [vmem:[%s1538_s1 + $0x168] sm:$0xff]  ;;  %v206_v13 = vld [vmem:[%s1538_s1 + $0x60] sm:$0xff]  ;;  %v221_v15 = vld [vmem:[%s1538_s1 + $0xd8] sm:$0xff] }
  0x10   : > { %849 = vmatprep.subr.mxu1 %v256_v7  ;;  %813 = vmatprep.subr.mxu0 %v223_v6  ;;  %v254_v14 = vld [vmem:[%s1538_s1 + $0x1e0] sm:$0xff]  ;;  %v205_v17 = vld [vmem:[%s1538_s1 + $0x58] sm:$0xff]  ;;  %v220_v19 = vld [vmem:[%s1538_s1 + $0xd0] sm:$0xff] }
  0x11   : > { %850 = vmatpush3.msra.mxu1 %v240_v9  ;;  %814 = vmatpush3.msra.mxu0 %v207_v8  ;;  %v238_v16 = vld [vmem:[%s1538_s1 + $0x160] sm:$0xff]  ;;  %v253_v18 = vld [vmem:[%s1538_s1 + $0x1d8] sm:$0xff]  ;;  %v204_v21 = vld [vmem:[%s1538_s1 + $0x50] sm:$0xff] }
  0x12   : > { %851 = vmatprep.subr.mxu1 %v255_v10  ;;  %815 = vmatprep.subr.mxu0 %v222_v11  ;;  %v237_v20 = vld [vmem:[%s1538_s1 + $0x158] sm:$0xff]  ;;  %v252_v22 = vld [vmem:[%s1538_s1 + $0x1d0] sm:$0xff]  ;;  %v219_v23 = vld [vmem:[%s1538_s1 + $0xc8] sm:$0xff] }
  0x13   : > { %852 = vmatpush3.msra.mxu1 %v239_v12  ;;  %816 = vmatpush3.msra.mxu0 %v206_v13  ;;  %v236_v24 = vld [vmem:[%s1538_s1 + $0x150] sm:$0xff]  ;;  %v203_v25 = vld [vmem:[%s1538_s1 + $0x48] sm:$0xff]  ;;  %v218_v27 = vld [vmem:[%s1538_s1 + $0xc0] sm:$0xff] }
  0x14   : > { %853 = vmatprep.subr.mxu1 %v254_v14  ;;  %817 = vmatprep.subr.mxu0 %v221_v15  ;;  %v251_v26 = vld [vmem:[%s1538_s1 + $0x1c8] sm:$0xff]  ;;  %v202_v29 = vld [vmem:[%s1538_s1 + $0x40] sm:$0xff]  ;;  %v217_v31 = vld [vmem:[%s1538_s1 + $0xb8] sm:$0xff] }
  0x15   : > { %854 = vmatpush3.msra.mxu1 %v238_v16  ;;  %818 = vmatpush3.msra.mxu0 %v205_v17  ;;  %v235_v28 = vld [vmem:[%s1538_s1 + $0x148] sm:$0xff]  ;;  %v250_v30 = vld [vmem:[%s1538_s1 + $0x1c0] sm:$0xff]  ;;  %v201_v33 = vld [vmem:[%s1538_s1 + $0x38] sm:$0xff] }
  0x16   : > { %855 = vmatprep.subr.mxu1 %v253_v18  ;;  %819 = vmatprep.subr.mxu0 %v220_v19  ;;  %v234_v32 = vld [vmem:[%s1538_s1 + $0x140] sm:$0xff]  ;;  %v249_v34 = vld [vmem:[%s1538_s1 + $0x1b8] sm:$0xff]  ;;  %v216_v35 = vld [vmem:[%s1538_s1 + $0xb0] sm:$0xff] }
  0x17   : > { %856 = vmatpush3.msra.mxu1 %v237_v20  ;;  %820 = vmatpush3.msra.mxu0 %v204_v21  ;;  %v233_v36 = vld [vmem:[%s1538_s1 + $0x138] sm:$0xff]  ;;  %v200_v37 = vld [vmem:[%s1538_s1 + $0x30] sm:$0xff]  ;;  %v215_v39 = vld [vmem:[%s1538_s1 + $0xa8] sm:$0xff] }
  0x18   : > { %857 = vmatprep.subr.mxu1 %v252_v22  ;;  %821 = vmatprep.subr.mxu0 %v219_v23  ;;  %v248_v38 = vld [vmem:[%s1538_s1 + $0x1b0] sm:$0xff]  ;;  %v199_v41 = vld [vmem:[%s1538_s1 + $0x28] sm:$0xff]  ;;  %v214_v43 = vld [vmem:[%s1538_s1 + $0xa0] sm:$0xff] }
  0x19   : > { %858 = vmatpush3.msra.mxu1 %v236_v24  ;;  %822 = vmatpush3.msra.mxu0 %v203_v25  ;;  %v232_v40 = vld [vmem:[%s1538_s1 + $0x130] sm:$0xff]  ;;  %v247_v42 = vld [vmem:[%s1538_s1 + $0x1a8] sm:$0xff]  ;;  %v198_v45 = vld [vmem:[%s1538_s1 + $0x20] sm:$0xff] }
  0x1a   : > { %859 = vmatprep.subr.mxu1 %v251_v26  ;;  %823 = vmatprep.subr.mxu0 %v218_v27  ;;  %v231_v44 = vld [vmem:[%s1538_s1 + $0x128] sm:$0xff]  ;;  %v246_v46 = vld [vmem:[%s1538_s1 + $0x1a0] sm:$0xff]  ;;  %v213_v47 = vld [vmem:[%s1538_s1 + $0x98] sm:$0xff] }
  0x1b   : > { %860 = vmatpush3.msra.mxu1 %v235_v28  ;;  %824 = vmatpush3.msra.mxu0 %v202_v29  ;;  %v230_v48 = vld [vmem:[%s1538_s1 + $0x120] sm:$0xff]  ;;  %v197_v49 = vld [vmem:[%s1538_s1 + $0x18] sm:$0xff]  ;;  %v212_v51 = vld [vmem:[%s1538_s1 + $0x90] sm:$0xff] }
  0x1c   : > { %861 = vmatprep.subr.mxu1 %v250_v30  ;;  %825 = vmatprep.subr.mxu0 %v217_v31  ;;  %v245_v50 = vld [vmem:[%s1538_s1 + $0x198] sm:$0xff]  ;;  %v196_v53 = vld [vmem:[%s1538_s1 + $0x10] sm:$0xff]  ;;  %v211_v55 = vld [vmem:[%s1538_s1 + $0x88] sm:$0xff] }
  0x1d   : > { %862 = vmatpush3.msra.mxu1 %v234_v32  ;;  %826 = vmatpush3.msra.mxu0 %v201_v33  ;;  %v229_v52 = vld [vmem:[%s1538_s1 + $0x118] sm:$0xff]  ;;  %v244_v54 = vld [vmem:[%s1538_s1 + $0x190] sm:$0xff]  ;;  %v195_v57 = vld [vmem:[%s1538_s1 + $0x8] sm:$0xff] }
  0x1e   : > { %863 = vmatprep.subr.mxu1 %v249_v34  ;;  %827 = vmatprep.subr.mxu0 %v216_v35  ;;  %v228_v56 = vld [vmem:[%s1538_s1 + $0x110] sm:$0xff]  ;;  %v243_v58 = vld [vmem:[%s1538_s1 + $0x188] sm:$0xff]  ;;  %v210_v59 = vld [vmem:[%s1538_s1 + $0x80] sm:$0xff] }
  0x1f   : > { %864 = vmatpush3.msra.mxu1 %v233_v36  ;;  %828 = vmatpush3.msra.mxu0 %v200_v37  ;;  %v791_v60 = vld [vmem:[%s1240_s28 + $0x18] sm:$0xff]  ;;  %v194_v61 = vld [vmem:[%s1538_s1] sm:$0xff]  ;;  %v227_v62 = vld [vmem:[%s1538_s1 + $0x108] sm:$0xff] }
  0x20   : > { %865 = vmatprep.subr.mxu1 %v248_v38  ;;  %829 = vmatprep.subr.mxu0 %v215_v39  ;;  %v171_v63 = vld [vmem:[%s1240_s28] sm:$0xff]  ;;  %v289_v1 = vld [vmem:[%s1538_s1 + $0x2f8] sm:$0xff]  ;;  %v795_v3 = vld [vmem:[%s1240_s28 + $0x48] sm:$0xff] }
  0x21   : > { %866 = vmatpush3.msra.mxu1 %v232_v40  ;;  %830 = vmatpush3.msra.mxu0 %v199_v41  ;;  %v242_v0 = vld [vmem:[%s1538_s1 + $0x180] sm:$0xff]  ;;  %v273_v4 = vld [vmem:[%s1538_s1 + $0x278] sm:$0xff]  ;;  %v793_v5 = vld [vmem:[%s1240_s28 + $0x30] sm:$0xff] }
  0x22   : > { %867 = vmatprep.subr.mxu1 %v247_v42  ;;  %831 = vmatprep.subr.mxu0 %v214_v43  ;;  %v226_v2 = vld [vmem:[%s1538_s1 + $0x100] sm:$0xff]  ;;  %v288_v6 = vld [vmem:[%s1538_s1 + $0x2f0] sm:$0xff]  ;;  %v321_v7 = vld [vmem:[%s1538_s1 + $0x3f8] sm:$0xff] }
  0x23   : > { %868 = vmatpush3.msra.mxu1 %v231_v44  ;;  %832 = vmatpush3.msra.mxu0 %v198_v45  ;;  %v272_v8 = vld [vmem:[%s1538_s1 + $0x270] sm:$0xff]  ;;  %v305_v9 = vld [vmem:[%s1538_s1 + $0x378] sm:$0xff]  ;;  %v287_v10 = vld [vmem:[%s1538_s1 + $0x2e8] sm:$0xff] }
  0x24   : > { %869 = vmatprep.subr.mxu1 %v246_v46  ;;  %833 = vmatprep.subr.mxu0 %v213_v47  ;;  %v320_v11 = vld [vmem:[%s1538_s1 + $0x3f0] sm:$0xff]  ;;  %v271_v12 = vld [vmem:[%s1538_s1 + $0x268] sm:$0xff]  ;;  %v286_v14 = vld [vmem:[%s1538_s1 + $0x2e0] sm:$0xff] }
  0x25   : > { %870 = vmatpush3.msra.mxu1 %v230_v48  ;;  %834 = vmatpush3.msra.mxu0 %v197_v49  ;;  %v304_v13 = vld [vmem:[%s1538_s1 + $0x370] sm:$0xff]  ;;  %v319_v15 = vld [vmem:[%s1538_s1 + $0x3e8] sm:$0xff]  ;;  %v270_v16 = vld [vmem:[%s1538_s1 + $0x260] sm:$0xff] }
  0x26   : > { %871 = vmatprep.subr.mxu1 %v245_v50  ;;  %835 = vmatprep.subr.mxu0 %v212_v51  ;;  %v303_v17 = vld [vmem:[%s1538_s1 + $0x368] sm:$0xff]  ;;  %v285_v18 = vld [vmem:[%s1538_s1 + $0x2d8] sm:$0xff]  ;;  %v318_v19 = vld [vmem:[%s1538_s1 + $0x3e0] sm:$0xff] }
  0x27   : > { %872 = vmatpush3.msra.mxu1 %v229_v52  ;;  %836 = vmatpush3.msra.mxu0 %v196_v53  ;;  %v269_v20 = vld [vmem:[%s1538_s1 + $0x258] sm:$0xff]  ;;  %v302_v21 = vld [vmem:[%s1538_s1 + $0x360] sm:$0xff]  ;;  %v284_v22 = vld [vmem:[%s1538_s1 + $0x2d0] sm:$0xff] }
  0x28   : > { %873 = vmatprep.subr.mxu1 %v244_v54  ;;  %837 = vmatprep.subr.mxu0 %v211_v55  ;;  %v317_v23 = vld [vmem:[%s1538_s1 + $0x3d8] sm:$0xff]  ;;  %v268_v24 = vld [vmem:[%s1538_s1 + $0x250] sm:$0xff]  ;;  %v283_v26 = vld [vmem:[%s1538_s1 + $0x2c8] sm:$0xff] }
  0x29   : > { %874 = vmatpush3.msra.mxu1 %v228_v56  ;;  %838 = vmatpush3.msra.mxu0 %v195_v57  ;;  %v301_v25 = vld [vmem:[%s1538_s1 + $0x358] sm:$0xff]  ;;  %v316_v27 = vld [vmem:[%s1538_s1 + $0x3d0] sm:$0xff]  ;;  %v267_v28 = vld [vmem:[%s1538_s1 + $0x248] sm:$0xff] }
  0x2a   : > { %875 = vmatprep.subr.mxu1 %v243_v58  ;;  %839 = vmatprep.subr.mxu0 %v210_v59  ;;  %v300_v29 = vld [vmem:[%s1538_s1 + $0x350] sm:$0xff]  ;;  %v282_v30 = vld [vmem:[%s1538_s1 + $0x2c0] sm:$0xff]  ;;  %v315_v31 = vld [vmem:[%s1538_s1 + $0x3c8] sm:$0xff] }
  0x2b   : > { %409 = vmatprep.mubr.f32.mxu0 %v791_v60  ;;  %840 = vmatpush3.msra.mxu0 %v194_v61  ;;  %v266_v32 = vld [vmem:[%s1538_s1 + $0x240] sm:$0xff]  ;;  %v299_v33 = vld [vmem:[%s1538_s1 + $0x348] sm:$0xff]  ;;  %v281_v34 = vld [vmem:[%s1538_s1 + $0x2b8] sm:$0xff] }
  0x2c   : > { %876 = vmatpush3.msra.mxu1 %v227_v62  ;;  %410 = vmatmul.mubr.f32.vlgmr.msra.gmra.mxu0 %v171_v63  ;;  %v314_v35 = vld [vmem:[%s1538_s1 + $0x3c0] sm:$0xff]  ;;  %v265_v36 = vld [vmem:[%s1538_s1 + $0x238] sm:$0xff]  ;;  %v280_v38 = vld [vmem:[%s1538_s1 + $0x2b0] sm:$0xff] }
  0x2d   : > { %877 = vmatprep.subr.mxu1 %v242_v0  ;;  %885 = vmatprep.subr.mxu0 %v289_v1  ;;  %v298_v37 = vld [vmem:[%s1538_s1 + $0x340] sm:$0xff]  ;;  %v313_v39 = vld [vmem:[%s1538_s1 + $0x3b8] sm:$0xff]  ;;  %v264_v40 = vld [vmem:[%s1538_s1 + $0x230] sm:$0xff] }
  0x2e   : > { %878 = vmatpush3.msra.mxu1 %v226_v2  ;;  %484 = vmatprep.mubr.f32.mxu1 %v795_v3  ;;  %v297_v41 = vld [vmem:[%s1538_s1 + $0x338] sm:$0xff]  ;;  %v279_v42 = vld [vmem:[%s1538_s1 + $0x2a8] sm:$0xff]  ;;  %v312_v43 = vld [vmem:[%s1538_s1 + $0x3b0] sm:$0xff] }
  0x2f   : > { %886 = vmatpush3.msra.mxu0 %v273_v4  ;;  %485 = vmatmul.mubr.f32.vlgmr.msra.gmra.mxu1 %v793_v5  ;;  %v263_v44 = vld [vmem:[%s1538_s1 + $0x228] sm:$0xff]  ;;  %v296_v45 = vld [vmem:[%s1538_s1 + $0x330] sm:$0xff]  ;;  %v278_v46 = vld [vmem:[%s1538_s1 + $0x2a0] sm:$0xff] }
  0x30   : > { %887 = vmatprep.subr.mxu0 %v288_v6  ;;  %923 = vmatprep.subr.mxu1 %v321_v7  ;;  %v311_v47 = vld [vmem:[%s1538_s1 + $0x3a8] sm:$0xff]  ;;  %v262_v48 = vld [vmem:[%s1538_s1 + $0x220] sm:$0xff]  ;;  %v277_v50 = vld [vmem:[%s1538_s1 + $0x298] sm:$0xff] }
  0x31   : > { %888 = vmatpush3.msra.mxu0 %v272_v8  ;;  %924 = vmatpush3.msra.mxu1 %v305_v9  ;;  %v295_v49 = vld [vmem:[%s1538_s1 + $0x328] sm:$0xff]  ;;  %v310_v51 = vld [vmem:[%s1538_s1 + $0x3a0] sm:$0xff]  ;;  %v261_v52 = vld [vmem:[%s1538_s1 + $0x218] sm:$0xff] }
  0x32   : > { %889 = vmatprep.subr.mxu0 %v287_v10  ;;  %925 = vmatprep.subr.mxu1 %v320_v11  ;;  %v294_v53 = vld [vmem:[%s1538_s1 + $0x320] sm:$0xff]  ;;  %v276_v55 = vld [vmem:[%s1538_s1 + $0x290] sm:$0xff]  ;;  %v309_v56 = vld [vmem:[%s1538_s1 + $0x398] sm:$0xff] }
  0x33   : > { %890 = vmatpush3.msra.mxu0 %v271_v12  ;;  %926 = vmatpush3.msra.mxu1 %v304_v13  ;;  %v792_v54 = vld [vmem:[%s1240_s28 + $0x20] sm:$0xff]  ;;  %v172_v57 = vld [vmem:[%s1240_s28 + $0x8] sm:$0xff]  ;;  %v293_v58 = vld [vmem:[%s1538_s1 + $0x318] sm:$0xff] }
  0x34   : > { %891 = vmatprep.subr.mxu0 %v286_v14  ;;  %927 = vmatprep.subr.mxu1 %v319_v15  ;;  %v260_v59 = vld [vmem:[%s1538_s1 + $0x210] sm:$0xff]  ;;  %v275_v61 = vld [vmem:[%s1538_s1 + $0x288] sm:$0xff]  ;;  %v794_v63 = vld [vmem:[%s1240_s28 + $0x38] sm:$0xff] }
  0x35   : > { %892 = vmatpush3.msra.mxu0 %v270_v16  ;;  %928 = vmatpush3.msra.mxu1 %v303_v17  ;;  %v796_v60 = vld [vmem:[%s1240_s28 + $0x50] sm:$0xff]  ;;  %v259_v0 = vld [vmem:[%s1538_s1 + $0x208] sm:$0xff]  ;;  %v274_v2 = vld [vmem:[%s1538_s1 + $0x280] sm:$0xff] }
  0x36   : > { %893 = vmatprep.subr.mxu0 %v285_v18  ;;  %929 = vmatprep.subr.mxu1 %v318_v19  ;;  %v308_v62 = vld [vmem:[%s1538_s1 + $0x390] sm:$0xff]  ;;  %v307_v3 = vld [vmem:[%s1538_s1 + $0x388] sm:$0xff]  ;;  %v258_v4 = vld [vmem:[%s1538_s1 + $0x200] sm:$0xff] }
  0x37   : > { %894 = vmatpush3.msra.mxu0 %v269_v20  ;;  %930 = vmatpush3.msra.mxu1 %v302_v21  ;;  %v292_v1 = vld [vmem:[%s1538_s1 + $0x310] sm:$0xff]  ;;  %v799_v5 = vld [vmem:[%s1240_s28 + $0x78] sm:$0xff]  ;;  %v291_v6 = vld [vmem:[%s1538_s1 + $0x308] sm:$0xff] }
  0x38   : > { %895 = vmatprep.subr.mxu0 %v284_v22  ;;  %931 = vmatprep.subr.mxu1 %v317_v23  ;;  %v797_v7 = vld [vmem:[%s1240_s28 + $0x60] sm:$0xff]  ;;  %v337_v9 = vld [vmem:[%s1538_s1 + $0x478] sm:$0xff]  ;;  %v336_v13 = vld [vmem:[%s1538_s1 + $0x470] sm:$0xff] }
  0x39   : > { %896 = vmatpush3.msra.mxu0 %v268_v24  ;;  %932 = vmatpush3.msra.mxu1 %v301_v25  ;;  %v306_v8 = vld [vmem:[%s1538_s1 + $0x380] sm:$0xff]  ;;  %v798_v15 = vld [vmem:[%s1240_s28 + $0x68] sm:$0xff]  ;;  %v803_v20 = vld [vmem:[%s1240_s28 + $0x34] sm:$0xff] }
  0x3a   : > { %897 = vmatprep.subr.mxu0 %v283_v26  ;;  %933 = vmatprep.subr.mxu1 %v316_v27  ;;  %v290_v10 = vld [vmem:[%s1538_s1 + $0x300] sm:$0xff]  ;;  %v335_v16 = vld [vmem:[%s1538_s1 + $0x468] sm:$0xff]  ;;  %v333_v21 = vld [vmem:[%s1538_s1 + $0x458] sm:$0xff] }
  0x3b   : > { %898 = vmatpush3.msra.mxu0 %v267_v28  ;;  %934 = vmatpush3.msra.mxu1 %v300_v29  ;;  %v801_v11 = vld [vmem:[%s1240_s28 + $0x1c] sm:$0xff]  ;;  %v188_v12 = vld [vmem:[%s1240_s28 + $0x4] sm:$0xff]  ;;  %v189_v18 = vld [vmem:[%s1240_s28 + $0xc] sm:$0xff] }
  0x3c   : > { %899 = vmatprep.subr.mxu0 %v282_v30  ;;  %935 = vmatprep.subr.mxu1 %v315_v31  ;;  %v800_v14 = vld [vmem:[%s1240_s28 + $0x80] sm:$0xff]  ;;  %v332_v22 = vld [vmem:[%s1538_s1 + $0x450] sm:$0xff]  ;;  %v331_v23 = vld [vmem:[%s1538_s1 + $0x448] sm:$0xff] }
  0x3d   : > { %900 = vmatpush3.msra.mxu0 %v266_v32  ;;  %936 = vmatpush3.msra.mxu1 %v299_v33  ;;  %v802_v17 = vld [vmem:[%s1240_s28 + $0x24] sm:$0xff]  ;;  %v329_v25 = vld [vmem:[%s1538_s1 + $0x438] sm:$0xff]  ;;  %v328_v26 = vld [vmem:[%s1538_s1 + $0x430] sm:$0xff] }
  0x3e   : > { %901 = vmatprep.subr.mxu0 %v281_v34  ;;  %937 = vmatprep.subr.mxu1 %v314_v35  ;;  %v334_v19 = vld [vmem:[%s1538_s1 + $0x460] sm:$0xff]  ;;  %v327_v27 = vld [vmem:[%s1538_s1 + $0x428] sm:$0xff]  ;;  %v325_v29 = vld [vmem:[%s1538_s1 + $0x418] sm:$0xff] }
  0x3f   : > { %902 = vmatpush3.msra.mxu0 %v265_v36  ;;  %938 = vmatpush3.msra.mxu1 %v298_v37  ;;  %v330_v24 = vld [vmem:[%s1538_s1 + $0x440] sm:$0xff]  ;;  %v324_v30 = vld [vmem:[%s1538_s1 + $0x410] sm:$0xff]  ;;  %v323_v31 = vld [vmem:[%s1538_s1 + $0x408] sm:$0xff] }
  0x40   : > { %903 = vmatprep.subr.mxu0 %v280_v38  ;;  %939 = vmatprep.subr.mxu1 %v313_v39  ;;  %v326_v28 = vld [vmem:[%s1538_s1 + $0x420] sm:$0xff] }
  0x41   : > { %904 = vmatpush3.msra.mxu0 %v264_v40  ;;  %940 = vmatpush3.msra.mxu1 %v297_v41  ;;  %v322_v32 = vld [vmem:[%s1538_s1 + $0x400] sm:$0xff] }
  0x42   : > { %905 = vmatprep.subr.mxu0 %v279_v42  ;;  %941 = vmatprep.subr.mxu1 %v312_v43  ;;  %v804_v33 = vld [vmem:[%s1240_s28 + $0x3c] sm:$0xff] }
  0x43   : > { %906 = vmatpush3.msra.mxu0 %v263_v44  ;;  %942 = vmatpush3.msra.mxu1 %v296_v45 }
  0x44   : > { %907 = vmatprep.subr.mxu0 %v278_v46  ;;  %943 = vmatprep.subr.mxu1 %v311_v47 }
  0x45   : > { %908 = vmatpush3.msra.mxu0 %v262_v48  ;;  %944 = vmatpush3.msra.mxu1 %v295_v49  ;;  %v805_v49 = vld [vmem:[%s1539_s2] ss:$0 sm:$0xff] }
  0x46   : > { %909 = vmatprep.subr.mxu0 %v277_v50  ;;  %945 = vmatprep.subr.mxu1 %v310_v51 }
  0x47   : > { %910 = vmatpush3.msra.mxu0 %v261_v52  ;;  %946 = vmatpush3.msra.mxu1 %v294_v53 }
  0x48   : > { %414 = vmatprep.mubr.f32.mxu0 %v792_v54  ;;  %911 = vmatprep.subr.mxu0 %v276_v55 }
  0x49   : > { %947 = vmatprep.subr.mxu1 %v309_v56  ;;  %415 = vmatmul.mubr.f32.gmra.mxu0 %v172_v57 }
  0x4a   : > { %948 = vmatpush3.msra.mxu1 %v293_v58  ;;  %912 = vmatpush3.msra.mxu0 %v260_v59 }
  0x4b   : > { %489 = vmatprep.mubr.f32.mxu1 %v796_v60  ;;  %913 = vmatprep.subr.mxu0 %v275_v61 }
  0x4c   : > { %949 = vmatprep.subr.mxu1 %v308_v62  ;;  %490 = vmatmul.mubr.f32.gmra.mxu1 %v794_v63 }
  0x4d   : > { %914 = vmatpush3.msra.mxu0 %v259_v0  ;;  %950 = vmatpush3.msra.mxu1 %v292_v1 }
  0x4e   : > { %915 = vmatprep.subr.mxu0 %v274_v2  ;;  %951 = vmatprep.subr.mxu1 %v307_v3 }
  0x4f   : > { %916 = vmatpush3.msra.mxu0 %v258_v4  ;;  %559 = vmatprep.mubr.f32.mxu0 %v799_v5 }
  0x50   : > { %952 = vmatpush3.msra.mxu1 %v291_v6  ;;  %560 = vmatmul.mubr.f32.vlgmr.msra.gmra.mxu0 %v797_v7 }
  0x51   : > { %953 = vmatprep.subr.mxu1 %v306_v8  ;;  %979 = vmatprep.subr.mxu0 %v337_v9 }
  0x52   : > { %954 = vmatpush3.msra.mxu1 %v290_v10  ;;  %634 = vmatprep.mubr.f32.mxu1 %v801_v11 }
  0x53   : > { %980 = vmatpush3.msra.mxu0 %v337_v9  ;;  %635 = vmatmul.mubr.f32.vlgmr.msra.gmra.mxu1 %v188_v12 }
  0x54   : > { %981 = vmatprep.subr.mxu0 %v336_v13  ;;  %564 = vmatprep.mubr.f32.mxu0 %v800_v14 }
  0x55   : > { %982 = vmatpush3.msra.mxu0 %v336_v13  ;;  %639 = vmatprep.mubr.f32.mxu1 %v802_v17 }
  0x56   : > { %565 = vmatmul.mubr.f32.gmra.mxu0 %v798_v15  ;;  %983 = vmatprep.subr.mxu0 %v335_v16 }
  0x57   : > { %984 = vmatpush3.msra.mxu0 %v335_v16  ;;  %640 = vmatmul.mubr.f32.gmra.mxu1 %v189_v18 }
  0x58   : > { %985 = vmatprep.subr.mxu0 %v334_v19  ;;  %1011 = vmatprep.mubr.f32.mxu0 %v803_v20 }
  0x59   : > { %986 = vmatpush3.msra.mxu0 %v334_v19 }
  0x5a   : > { %987 = vmatprep.subr.mxu0 %v333_v21 }
  0x5b   : > { %988 = vmatpush3.msra.mxu0 %v333_v21 }
  0x5c   : > { %989 = vmatprep.subr.mxu0 %v332_v22 }
  0x5d   : > { %990 = vmatpush3.msra.mxu0 %v332_v22 }
  0x5e   : > { %991 = vmatprep.subr.mxu0 %v331_v23 }
  0x5f   : > { %992 = vmatpush3.msra.mxu0 %v331_v23 }
  0x60   : > { %993 = vmatprep.subr.mxu0 %v330_v24 }
  0x61   : > { %994 = vmatpush3.msra.mxu0 %v330_v24 }
  0x62   : > { %995 = vmatprep.subr.mxu0 %v329_v25 }
  0x63   : > { %996 = vmatpush3.msra.mxu0 %v329_v25 }
  0x64   : > { %997 = vmatprep.subr.mxu0 %v328_v26 }
  0x65   : > { %998 = vmatpush3.msra.mxu0 %v328_v26 }
  0x66   : > { %999 = vmatprep.subr.mxu0 %v327_v27 }
  0x67   : > { %1000 = vmatpush3.msra.mxu0 %v327_v27 }
  0x68   : > { %1001 = vmatprep.subr.mxu0 %v326_v28 }
  0x69   : > { %1002 = vmatpush3.msra.mxu0 %v326_v28 }
  0x6a   : > { %1003 = vmatprep.subr.mxu0 %v325_v29 }
  0x6b   : > { %1004 = vmatpush3.msra.mxu0 %v325_v29 }
  0x6c   : > { %1005 = vmatprep.subr.mxu0 %v324_v30 }
  0x6d   : > { %1006 = vmatpush3.msra.mxu0 %v324_v30 }
  0x6e   : > { %1007 = vmatprep.subr.mxu0 %v323_v31 }
  0x6f   : > { %1008 = vmatpush3.msra.mxu0 %v323_v31 }
  0x70   : > { %1009 = vmatprep.subr.mxu0 %v322_v32 }
  0x71   : > { %1010 = vmatpush3.msra.mxu0 %v322_v32 }
  0x72   : > { %1012 = vmatmul.mubr.f32.vlgmr.msra.gmra.mxu0 %v804_v33 }
  0xec   : > { %v841_v34 = vpop.f32.mrf.mxu0 }
  0xee   : > { %v842_v35 = vpop.f32.mrf.mxu0 }
  0xef   : > { %v879_v36 = vpop.f32.mrf.mxu1  ;;  %v843_v48 = vadd.f32 %v842_v35, %v841_v34 }
  0xf1   : > { %v880_v38 = vpop.f32.mrf.mxu1  ;;  %v412_v54 = vadd.f32 %v843_v48, %v805_v49 }
  0xf2   : > { %v881_v55 = vadd.f32 %v880_v38, %v879_v36 }
  0xf4   : > { %v487_v60 = vadd.f32 %v881_v55, %v412_v54 }
 0x109   : > { %v844_v37 = vpop.f32.mrf.mxu0 }
 0x10b   : > { %v845_v39 = vpop.f32.mrf.mxu0 }
 0x10c   : > { %v882_v40 = vpop.f32.mrf.mxu1  ;;  %v846_v47 = vadd.f32 %v845_v39, %v844_v37 }
 0x10e   : > { %v883_v41 = vpop.f32.mrf.mxu1  ;;  %v417_v52 = vadd.f32 %v846_v47, %v805_v49 }
 0x10f   : > { %v884_v53 = vadd.f32 %v883_v41, %v882_v40 }
 0x110   : > { %v917_v42 = vpop.f32.mrf.mxu0 }
 0x111   : > { %v492_v58 = vadd.f32 %v884_v53, %v417_v52 }
 0x112   : > { %v918_v43 = vpop.f32.mrf.mxu0 }
 0x113   : > { %v955_v44 = vpop.f32.mrf.mxu1  ;;  %v919_v59 = vadd.f32 %v918_v43, %v917_v42 }
 0x115   : > { %v956_v46 = vpop.f32.mrf.mxu1  ;;  %v562_v63 = vadd.f32 %v919_v59, %v487_v60 }
 0x116   : > { %v920_v45 = vpop.f32.mrf.mxu0  ;;  %v957_v0 = vadd.f32 %v956_v46, %v955_v44 }
 0x117   : > { %v958_v51 = vpop.f32.mrf.mxu1 }
 0x118   : > { %v921_v50 = vpop.f32.mrf.mxu0  ;;  %v637_v4 = vadd.f32 %v957_v0, %v562_v63 }
 0x119   : > { %v922_v56 = vadd.f32 %v921_v50, %v920_v45  ;;  %v959_v57 = vpop.f32.mrf.mxu1 }
 0x11a   : > { %v960_v62 = vadd.f32 %v959_v57, %v958_v51 }
 0x11b   : > { %v567_v61 = vadd.f32 %v922_v56, %v492_v58 }
 0x11d   : > { %v642_v1 = vadd.f32 %v960_v62, %v567_v61 }
 0x132   : > { %v1013_v2 = vpop.f32.mrf.mxu0 }
 0x133   : > { %v717_v3 = vadd.f32 %v1013_v2, %v642_v1 }
 0x134   : > { %v711_v5 = vpop.f32.mrf.mxu0 }
 0x135   : > { %vm721_vm0 = vcmp.ge.f32.partialorder %v717_v3, 0.0  ;;  %v723_v6 = vmul.f32 0.01, %v717_v3  ;;  %v712_v7 = vadd.f32 %v711_v5, %v637_v4 }
 0x137   : > { %v725_v8 = vsel %vm721_vm0, %v717_v3, %v723_v6  ;;  %vm720_vm1 = vcmp.ge.f32.partialorder %v712_v7, 0.0  ;;  %v722_v9 = vmul.f32 0.01, %v712_v7 }
 0x138   : > { %727 = vst [vmem:[%s170_s18 + $0x8] sm:$0xff] %v725_v8 }
 0x139   : > { %v724_v10 = vsel %vm720_vm1, %v712_v7, %v722_v9 }
 0x13a   : > { %726 = vst [vmem:[%s170_s18] sm:$0xff] %v724_v10 }
 0x13b PF: > { %s13_s12 = sadd.s32 1, %s1029_s12  }
 0x13c   : > { %p10_p4 = scmp.ge.s32.totalorder %s13_s12, 4  }
 0x13e   :  { %12 = sbr.rel (!%p10_p4) target bundleno = 1 (0x1), region = 67 }

// kernel: gradual_cnn_block.6
= control target key start
LH: loop header
LB: loop body
LE: loop exit
PB: predicated region body
PF: predicated region fallthrough
CT: control target
= control target key end

     0   :  { %s991_s12 = smov 0   ;;  %s1468_s0 = inlined_call_operand.vmem [shape: f32[2,6,6,128], index: 0, kind: input, shape index: {}]   ;;  %s1469_s1 = inlined_call_operand.vmem [shape: f32[1152,128], index: 1, kind: input, shape index: {}]   ;;  %s1470_s2 = inlined_call_operand.vmem [shape: f32[1,128], index: 2, kind: input, shape index: {}]   ;;  %s1471_s3 = inlined_call_operand.vmem [shape: f32[2,4,128], index: 3, kind: output, shape index: {}]  }
   0x1 LB: > { %s741_s13 = sadd.s32 4294967295, %s967_s12   ;;  %p745_p0 = scmp.ge.s32.totalorder %s967_s12, 1  ;;  %s967_s12 = sphi %s991_s12, %s13_s12  }
   0x2   : > { %p137_p1 = scmp.lt.s32.totalorder %s967_s12, 3 }
   0x4   : > { %p138_p2 = pnand %p745_p0, %p137_p1 }
   0x5   : > { %p1094_p3 = scmp.lt.s32.totalorder (!%p138_p2), %s741_s13, 1 }
   0x6   : > { %141 = sbr.rel (%p138_p2) target bundleno = 311 (0x137), region = 32 }
   0xb   : > { %v214_v0 = vld [vmem:[%s1469_s1 + $0xf8] sm:$0xff]  ;;  %v213_v2 = vld [vmem:[%s1469_s1 + $0xf0] sm:$0xff]  ;;  %v212_v6 = vld [vmem:[%s1469_s1 + $0xe8] sm:$0xff]  ;;  %s1474_s13 = smov (!%p1094_p3, %s741_s13), 1  ;;  %vm970_vm0 = vmmov 0  }
   0xc   : > { %v198_v1 = vld [vmem:[%s1469_s1 + $0x78] sm:$0xff]  ;;  %758 = vmatprep.subr.mxu0 %v214_v0  ;;  %v197_v4 = vld [vmem:[%s1469_s1 + $0x70] sm:$0xff]  ;;  %v196_v8 = vld [vmem:[%s1469_s1 + $0x68] sm:$0xff]  ;;  %s950_s7 = smul.u32 48, %s1474_s13 }
   0xd   : > { %v246_v3 = vld [vmem:[%s1469_s1 + $0x1f8] sm:$0xff]  ;;  %759 = vmatpush3.msra.mxu0 %v198_v1  ;;  %v245_v7 = vld [vmem:[%s1469_s1 + $0x1f0] sm:$0xff]  ;;  %v244_v10 = vld [vmem:[%s1469_s1 + $0x1e8] sm:$0xff] }
   0xe   : > { %v230_v5 = vld [vmem:[%s1469_s1 + $0x178] sm:$0xff]  ;;  %793 = vmatprep.subr.mxu1 %v246_v3  ;;  %760 = vmatprep.subr.mxu0 %v213_v2  ;;  %v229_v9 = vld [vmem:[%s1469_s1 + $0x170] sm:$0xff]  ;;  %v211_v11 = vld [vmem:[%s1469_s1 + $0xe0] sm:$0xff]  ;;  %s1180_s28 = scalar_lea.vmem %s1468_s0, %s950_s7 }
   0xf   : > { %794 = vmatpush3.msra.mxu1 %v230_v5  ;;  %761 = vmatpush3.msra.mxu0 %v197_v4  ;;  %v228_v12 = vld [vmem:[%s1469_s1 + $0x168] sm:$0xff]  ;;  %v195_v13 = vld [vmem:[%s1469_s1 + $0x60] sm:$0xff]  ;;  %v210_v15 = vld [vmem:[%s1469_s1 + $0xd8] sm:$0xff] }
  0x10   : > { %795 = vmatprep.subr.mxu1 %v245_v7  ;;  %762 = vmatprep.subr.mxu0 %v212_v6  ;;  %v243_v14 = vld [vmem:[%s1469_s1 + $0x1e0] sm:$0xff]  ;;  %v194_v17 = vld [vmem:[%s1469_s1 + $0x58] sm:$0xff]  ;;  %v209_v19 = vld [vmem:[%s1469_s1 + $0xd0] sm:$0xff] }
  0x11   : > { %796 = vmatpush3.msra.mxu1 %v229_v9  ;;  %763 = vmatpush3.msra.mxu0 %v196_v8  ;;  %v227_v16 = vld [vmem:[%s1469_s1 + $0x160] sm:$0xff]  ;;  %v242_v18 = vld [vmem:[%s1469_s1 + $0x1d8] sm:$0xff]  ;;  %v193_v21 = vld [vmem:[%s1469_s1 + $0x50] sm:$0xff] }
  0x12   : > { %797 = vmatprep.subr.mxu1 %v244_v10  ;;  %764 = vmatprep.subr.mxu0 %v211_v11  ;;  %v226_v20 = vld [vmem:[%s1469_s1 + $0x158] sm:$0xff]  ;;  %v241_v22 = vld [vmem:[%s1469_s1 + $0x1d0] sm:$0xff]  ;;  %v208_v23 = vld [vmem:[%s1469_s1 + $0xc8] sm:$0xff] }
  0x13   : > { %798 = vmatpush3.msra.mxu1 %v228_v12  ;;  %765 = vmatpush3.msra.mxu0 %v195_v13  ;;  %v225_v24 = vld [vmem:[%s1469_s1 + $0x150] sm:$0xff]  ;;  %v192_v25 = vld [vmem:[%s1469_s1 + $0x48] sm:$0xff]  ;;  %v207_v27 = vld [vmem:[%s1469_s1 + $0xc0] sm:$0xff] }
  0x14   : > { %799 = vmatprep.subr.mxu1 %v243_v14  ;;  %766 = vmatprep.subr.mxu0 %v210_v15  ;;  %v240_v26 = vld [vmem:[%s1469_s1 + $0x1c8] sm:$0xff]  ;;  %v191_v29 = vld [vmem:[%s1469_s1 + $0x40] sm:$0xff]  ;;  %v206_v31 = vld [vmem:[%s1469_s1 + $0xb8] sm:$0xff] }
  0x15   : > { %800 = vmatpush3.msra.mxu1 %v227_v16  ;;  %767 = vmatpush3.msra.mxu0 %v194_v17  ;;  %v224_v28 = vld [vmem:[%s1469_s1 + $0x148] sm:$0xff]  ;;  %v239_v30 = vld [vmem:[%s1469_s1 + $0x1c0] sm:$0xff]  ;;  %v190_v33 = vld [vmem:[%s1469_s1 + $0x38] sm:$0xff] }
  0x16   : > { %801 = vmatprep.subr.mxu1 %v242_v18  ;;  %768 = vmatprep.subr.mxu0 %v209_v19  ;;  %v223_v32 = vld [vmem:[%s1469_s1 + $0x140] sm:$0xff]  ;;  %v238_v34 = vld [vmem:[%s1469_s1 + $0x1b8] sm:$0xff]  ;;  %v205_v35 = vld [vmem:[%s1469_s1 + $0xb0] sm:$0xff] }
  0x17   : > { %802 = vmatpush3.msra.mxu1 %v226_v20  ;;  %769 = vmatpush3.msra.mxu0 %v193_v21  ;;  %v222_v36 = vld [vmem:[%s1469_s1 + $0x138] sm:$0xff]  ;;  %v189_v37 = vld [vmem:[%s1469_s1 + $0x30] sm:$0xff]  ;;  %v204_v39 = vld [vmem:[%s1469_s1 + $0xa8] sm:$0xff] }
  0x18   : > { %803 = vmatprep.subr.mxu1 %v241_v22  ;;  %770 = vmatprep.subr.mxu0 %v208_v23  ;;  %v237_v38 = vld [vmem:[%s1469_s1 + $0x1b0] sm:$0xff]  ;;  %v188_v41 = vld [vmem:[%s1469_s1 + $0x28] sm:$0xff]  ;;  %v203_v43 = vld [vmem:[%s1469_s1 + $0xa0] sm:$0xff] }
  0x19   : > { %804 = vmatpush3.msra.mxu1 %v225_v24  ;;  %771 = vmatpush3.msra.mxu0 %v192_v25  ;;  %v221_v40 = vld [vmem:[%s1469_s1 + $0x130] sm:$0xff]  ;;  %v236_v42 = vld [vmem:[%s1469_s1 + $0x1a8] sm:$0xff]  ;;  %v187_v45 = vld [vmem:[%s1469_s1 + $0x20] sm:$0xff] }
  0x1a   : > { %805 = vmatprep.subr.mxu1 %v240_v26  ;;  %772 = vmatprep.subr.mxu0 %v207_v27  ;;  %v220_v44 = vld [vmem:[%s1469_s1 + $0x128] sm:$0xff]  ;;  %v235_v46 = vld [vmem:[%s1469_s1 + $0x1a0] sm:$0xff]  ;;  %v202_v47 = vld [vmem:[%s1469_s1 + $0x98] sm:$0xff] }
  0x1b   : > { %806 = vmatpush3.msra.mxu1 %v224_v28  ;;  %773 = vmatpush3.msra.mxu0 %v191_v29  ;;  %v219_v48 = vld [vmem:[%s1469_s1 + $0x120] sm:$0xff]  ;;  %v186_v49 = vld [vmem:[%s1469_s1 + $0x18] sm:$0xff]  ;;  %v201_v51 = vld [vmem:[%s1469_s1 + $0x90] sm:$0xff] }
  0x1c   : > { %807 = vmatprep.subr.mxu1 %v239_v30  ;;  %774 = vmatprep.subr.mxu0 %v206_v31  ;;  %v234_v50 = vld [vmem:[%s1469_s1 + $0x198] sm:$0xff]  ;;  %v185_v53 = vld [vmem:[%s1469_s1 + $0x10] sm:$0xff]  ;;  %v200_v55 = vld [vmem:[%s1469_s1 + $0x88] sm:$0xff] }
  0x1d   : > { %808 = vmatpush3.msra.mxu1 %v223_v32  ;;  %775 = vmatpush3.msra.mxu0 %v190_v33  ;;  %v218_v52 = vld [vmem:[%s1469_s1 + $0x118] sm:$0xff]  ;;  %v233_v54 = vld [vmem:[%s1469_s1 + $0x190] sm:$0xff]  ;;  %v184_v57 = vld [vmem:[%s1469_s1 + $0x8] sm:$0xff] }
  0x1e   : > { %809 = vmatprep.subr.mxu1 %v238_v34  ;;  %776 = vmatprep.subr.mxu0 %v205_v35  ;;  %v217_v56 = vld [vmem:[%s1469_s1 + $0x110] sm:$0xff]  ;;  %v232_v58 = vld [vmem:[%s1469_s1 + $0x188] sm:$0xff]  ;;  %v199_v59 = vld [vmem:[%s1469_s1 + $0x80] sm:$0xff] }
  0x1f   : > { %810 = vmatpush3.msra.mxu1 %v222_v36  ;;  %777 = vmatpush3.msra.mxu0 %v189_v37  ;;  %v748_v60 = vld [vmem:[%s1180_s28 + $0x8] sm:$0xf]  ;;  %v183_v61 = vld [vmem:[%s1469_s1] sm:$0xff]  ;;  %v278_v1 = vld [vmem:[%s1469_s1 + $0x2f8] sm:$0xff] }
  0x20   : > { %811 = vmatprep.subr.mxu1 %v237_v38  ;;  %778 = vmatprep.subr.mxu0 %v204_v39  ;;  %v216_v62 = vld [vmem:[%s1469_s1 + $0x108] sm:$0xff]  ;;  %v169_v63 = vld [vmem:[%s1180_s28] sm:$0xf]  ;;  %v750_v3 = vld [vmem:[%s1180_s28 + $0x18] sm:$0xf] }
  0x21   : > { %812 = vmatpush3.msra.mxu1 %v221_v40  ;;  %779 = vmatpush3.msra.mxu0 %v188_v41  ;;  %v231_v0 = vld [vmem:[%s1469_s1 + $0x180] sm:$0xff]  ;;  %v262_v4 = vld [vmem:[%s1469_s1 + $0x278] sm:$0xff]  ;;  %v749_v5 = vld [vmem:[%s1180_s28 + $0x10] sm:$0xf] }
  0x22   : > { %813 = vmatprep.subr.mxu1 %v236_v42  ;;  %780 = vmatprep.subr.mxu0 %v203_v43  ;;  %v215_v2 = vld [vmem:[%s1469_s1 + $0x100] sm:$0xff]  ;;  %v277_v6 = vld [vmem:[%s1469_s1 + $0x2f0] sm:$0xff]  ;;  %v310_v7 = vld [vmem:[%s1469_s1 + $0x3f8] sm:$0xff] }
  0x23   : > { %814 = vmatpush3.msra.mxu1 %v220_v44  ;;  %781 = vmatpush3.msra.mxu0 %v187_v45  ;;  %v261_v8 = vld [vmem:[%s1469_s1 + $0x270] sm:$0xff]  ;;  %v294_v9 = vld [vmem:[%s1469_s1 + $0x378] sm:$0xff]  ;;  %v276_v10 = vld [vmem:[%s1469_s1 + $0x2e8] sm:$0xff] }
  0x24   : > { %815 = vmatprep.subr.mxu1 %v235_v46  ;;  %782 = vmatprep.subr.mxu0 %v202_v47  ;;  %v309_v11 = vld [vmem:[%s1469_s1 + $0x3f0] sm:$0xff]  ;;  %v260_v12 = vld [vmem:[%s1469_s1 + $0x268] sm:$0xff]  ;;  %v275_v14 = vld [vmem:[%s1469_s1 + $0x2e0] sm:$0xff] }
  0x25   : > { %816 = vmatpush3.msra.mxu1 %v219_v48  ;;  %783 = vmatpush3.msra.mxu0 %v186_v49  ;;  %v293_v13 = vld [vmem:[%s1469_s1 + $0x370] sm:$0xff]  ;;  %v308_v15 = vld [vmem:[%s1469_s1 + $0x3e8] sm:$0xff]  ;;  %v259_v16 = vld [vmem:[%s1469_s1 + $0x260] sm:$0xff] }
  0x26   : > { %817 = vmatprep.subr.mxu1 %v234_v50  ;;  %784 = vmatprep.subr.mxu0 %v201_v51  ;;  %v292_v17 = vld [vmem:[%s1469_s1 + $0x368] sm:$0xff]  ;;  %v274_v18 = vld [vmem:[%s1469_s1 + $0x2d8] sm:$0xff]  ;;  %v307_v19 = vld [vmem:[%s1469_s1 + $0x3e0] sm:$0xff] }
  0x27   : > { %818 = vmatpush3.msra.mxu1 %v218_v52  ;;  %785 = vmatpush3.msra.mxu0 %v185_v53  ;;  %v258_v20 = vld [vmem:[%s1469_s1 + $0x258] sm:$0xff]  ;;  %v291_v21 = vld [vmem:[%s1469_s1 + $0x360] sm:$0xff]  ;;  %v273_v22 = vld [vmem:[%s1469_s1 + $0x2d0] sm:$0xff] }
  0x28   : > { %819 = vmatprep.subr.mxu1 %v233_v54  ;;  %786 = vmatprep.subr.mxu0 %v200_v55  ;;  %v306_v23 = vld [vmem:[%s1469_s1 + $0x3d8] sm:$0xff]  ;;  %v257_v24 = vld [vmem:[%s1469_s1 + $0x250] sm:$0xff]  ;;  %v272_v26 = vld [vmem:[%s1469_s1 + $0x2c8] sm:$0xff] }
  0x29   : > { %820 = vmatpush3.msra.mxu1 %v217_v56  ;;  %787 = vmatpush3.msra.mxu0 %v184_v57  ;;  %v290_v25 = vld [vmem:[%s1469_s1 + $0x358] sm:$0xff]  ;;  %v305_v27 = vld [vmem:[%s1469_s1 + $0x3d0] sm:$0xff]  ;;  %v256_v28 = vld [vmem:[%s1469_s1 + $0x248] sm:$0xff] }
  0x2a   : > { %821 = vmatprep.subr.mxu1 %v232_v58  ;;  %788 = vmatprep.subr.mxu0 %v199_v59  ;;  %v289_v29 = vld [vmem:[%s1469_s1 + $0x350] sm:$0xff]  ;;  %v271_v30 = vld [vmem:[%s1469_s1 + $0x2c0] sm:$0xff]  ;;  %v304_v31 = vld [vmem:[%s1469_s1 + $0x3c8] sm:$0xff] }
  0x2b   : > { %398 = vmatprep.mubr.f32.mxu0 %v748_v60  ;;  %789 = vmatpush3.msra.mxu0 %v183_v61  ;;  %v255_v32 = vld [vmem:[%s1469_s1 + $0x240] sm:$0xff]  ;;  %v288_v33 = vld [vmem:[%s1469_s1 + $0x348] sm:$0xff]  ;;  %v270_v34 = vld [vmem:[%s1469_s1 + $0x2b8] sm:$0xff] }
  0x2c   : > { %822 = vmatpush3.msra.mxu1 %v216_v62  ;;  %399 = vmatmul.mubr.f32.vlgmr.msra.gmra.mxu0 %v169_v63  ;;  %v303_v35 = vld [vmem:[%s1469_s1 + $0x3c0] sm:$0xff]  ;;  %v254_v36 = vld [vmem:[%s1469_s1 + $0x238] sm:$0xff]  ;;  %v269_v38 = vld [vmem:[%s1469_s1 + $0x2b0] sm:$0xff] }
  0x2d   : > { %823 = vmatprep.subr.mxu1 %v231_v0  ;;  %828 = vmatprep.subr.mxu0 %v278_v1  ;;  %v287_v37 = vld [vmem:[%s1469_s1 + $0x340] sm:$0xff]  ;;  %v302_v39 = vld [vmem:[%s1469_s1 + $0x3b8] sm:$0xff]  ;;  %v253_v40 = vld [vmem:[%s1469_s1 + $0x230] sm:$0xff] }
  0x2e   : > { %824 = vmatpush3.msra.mxu1 %v215_v2  ;;  %468 = vmatprep.mubr.f32.mxu1 %v750_v3  ;;  %v286_v41 = vld [vmem:[%s1469_s1 + $0x338] sm:$0xff]  ;;  %v268_v42 = vld [vmem:[%s1469_s1 + $0x2a8] sm:$0xff]  ;;  %v301_v43 = vld [vmem:[%s1469_s1 + $0x3b0] sm:$0xff] }
  0x2f   : > { %829 = vmatpush3.msra.mxu0 %v262_v4  ;;  %469 = vmatmul.mubr.f32.vlgmr.msra.gmra.mxu1 %v749_v5  ;;  %v252_v44 = vld [vmem:[%s1469_s1 + $0x228] sm:$0xff]  ;;  %v285_v45 = vld [vmem:[%s1469_s1 + $0x330] sm:$0xff]  ;;  %v267_v46 = vld [vmem:[%s1469_s1 + $0x2a0] sm:$0xff] }
  0x30   : > { %830 = vmatprep.subr.mxu0 %v277_v6  ;;  %863 = vmatprep.subr.mxu1 %v310_v7  ;;  %v300_v47 = vld [vmem:[%s1469_s1 + $0x3a8] sm:$0xff]  ;;  %v251_v48 = vld [vmem:[%s1469_s1 + $0x220] sm:$0xff]  ;;  %v266_v50 = vld [vmem:[%s1469_s1 + $0x298] sm:$0xff] }
  0x31   : > { %831 = vmatpush3.msra.mxu0 %v261_v8  ;;  %864 = vmatpush3.msra.mxu1 %v294_v9  ;;  %v284_v49 = vld [vmem:[%s1469_s1 + $0x328] sm:$0xff]  ;;  %v299_v51 = vld [vmem:[%s1469_s1 + $0x3a0] sm:$0xff]  ;;  %v250_v52 = vld [vmem:[%s1469_s1 + $0x218] sm:$0xff]  ;;  %v969_v9 = vmov 0.0  }
  0x32   : > { %832 = vmatprep.subr.mxu0 %v276_v10  ;;  %865 = vmatprep.subr.mxu1 %v309_v11  ;;  %v283_v53 = vld [vmem:[%s1469_s1 + $0x320] sm:$0xff]  ;;  %v265_v54 = vld [vmem:[%s1469_s1 + $0x290] sm:$0xff]  ;;  %v298_v55 = vld [vmem:[%s1469_s1 + $0x398] sm:$0xff] }
  0x33   : > { %833 = vmatpush3.msra.mxu0 %v260_v12  ;;  %866 = vmatpush3.msra.mxu1 %v293_v13  ;;  %v249_v56 = vld [vmem:[%s1469_s1 + $0x210] sm:$0xff]  ;;  %v282_v57 = vld [vmem:[%s1469_s1 + $0x318] sm:$0xff]  ;;  %v264_v58 = vld [vmem:[%s1469_s1 + $0x288] sm:$0xff] }
  0x34   : > { %834 = vmatprep.subr.mxu0 %v275_v14  ;;  %867 = vmatprep.subr.mxu1 %v308_v15  ;;  %v297_v59 = vld [vmem:[%s1469_s1 + $0x390] sm:$0xff]  ;;  %v248_v60 = vld [vmem:[%s1469_s1 + $0x208] sm:$0xff]  ;;  %v263_v62 = vld [vmem:[%s1469_s1 + $0x280] sm:$0xff] }
  0x35   : > { %835 = vmatpush3.msra.mxu0 %v259_v16  ;;  %868 = vmatpush3.msra.mxu1 %v292_v17  ;;  %v281_v61 = vld [vmem:[%s1469_s1 + $0x310] sm:$0xff]  ;;  %v296_v63 = vld [vmem:[%s1469_s1 + $0x388] sm:$0xff]  ;;  %v247_v0 = vld [vmem:[%s1469_s1 + $0x200] sm:$0xff] }
  0x36   : > { %836 = vmatprep.subr.mxu0 %v274_v18  ;;  %869 = vmatprep.subr.mxu1 %v307_v19  ;;  %v752_v1 = vld [vmem:[%s1180_s28 + $0x28] sm:$0xf]  ;;  %v751_v3 = vld [vmem:[%s1180_s28 + $0x20] sm:$0xf]  ;;  %v326_v7 = vld [vmem:[%s1469_s1 + $0x478] sm:$0xff] }
  0x37   : > { %837 = vmatpush3.msra.mxu0 %v258_v20  ;;  %870 = vmatpush3.msra.mxu1 %v291_v21  ;;  %v280_v2 = vld [vmem:[%s1469_s1 + $0x308] sm:$0xff]  ;;  %v295_v4 = vld [vmem:[%s1469_s1 + $0x380] sm:$0xff]  ;;  %v325_v10 = vld [vmem:[%s1469_s1 + $0x470] sm:$0xff] }
  0x38   : > { %838 = vmatprep.subr.mxu0 %v273_v22  ;;  %871 = vmatprep.subr.mxu1 %v306_v23  ;;  %v279_v5 = vld [vmem:[%s1469_s1 + $0x300] sm:$0xff]  ;;  %v753_v6 = vld [vmem:[%s1180_s28 + $0xa] sm:$0xf]  ;;  %v322_v13 = vld [vmem:[%s1469_s1 + $0x458] sm:$0xff] }
  0x39   : > { %839 = vmatpush3.msra.mxu0 %v257_v24  ;;  %872 = vmatpush3.msra.mxu1 %v290_v25  ;;  %v180_v8 = vld [vmem:[%s1180_s28 + $0x2] sm:$0xf]  ;;  %v324_v11 = vld [vmem:[%s1469_s1 + $0x468] sm:$0xff]  ;;  %v321_v14 = vld [vmem:[%s1469_s1 + $0x450] sm:$0xff] }
  0x3a   : > { %840 = vmatprep.subr.mxu0 %v272_v26  ;;  %873 = vmatprep.subr.mxu1 %v305_v27  ;;  %v323_v12 = vld [vmem:[%s1469_s1 + $0x460] sm:$0xff]  ;;  %v320_v15 = vld [vmem:[%s1469_s1 + $0x448] sm:$0xff]  ;;  %v318_v17 = vld [vmem:[%s1469_s1 + $0x438] sm:$0xff] }
  0x3b   : > { %841 = vmatpush3.msra.mxu0 %v256_v28  ;;  %874 = vmatpush3.msra.mxu1 %v289_v29  ;;  %v319_v16 = vld [vmem:[%s1469_s1 + $0x440] sm:$0xff]  ;;  %v317_v18 = vld [vmem:[%s1469_s1 + $0x430] sm:$0xff]  ;;  %v316_v19 = vld [vmem:[%s1469_s1 + $0x428] sm:$0xff] }
  0x3c   : > { %842 = vmatprep.subr.mxu0 %v271_v30  ;;  %875 = vmatprep.subr.mxu1 %v304_v31  ;;  %v315_v20 = vld [vmem:[%s1469_s1 + $0x420] sm:$0xff]  ;;  %v314_v21 = vld [vmem:[%s1469_s1 + $0x418] sm:$0xff]  ;;  %v313_v22 = vld [vmem:[%s1469_s1 + $0x410] sm:$0xff] }
  0x3d   : > { %843 = vmatpush3.msra.mxu0 %v255_v32  ;;  %876 = vmatpush3.msra.mxu1 %v288_v33  ;;  %v312_v23 = vld [vmem:[%s1469_s1 + $0x408] sm:$0xff]  ;;  %v311_v24 = vld [vmem:[%s1469_s1 + $0x400] sm:$0xff]  ;;  %v754_v25 = vld [vmem:[%s1180_s28 + $0x12] sm:$0xf]  ;;  %s747_s28 = sshll.u32 %s1474_s13, 2 }
  0x3e   : > { %844 = vmatprep.subr.mxu0 %v270_v34  ;;  %877 = vmatprep.subr.mxu1 %v303_v35  ;;  %v755_v31 = vld [vmem:[%s1470_s2] ss:$0 sm:$0xff]  ;;  %s168_s18 = scalar_lea.vmem %s1471_s3, %s747_s28 }
  0x3f   : > { %845 = vmatpush3.msra.mxu0 %v254_v36  ;;  %878 = vmatpush3.msra.mxu1 %v287_v37 }
  0x40   : > { %846 = vmatprep.subr.mxu0 %v269_v38  ;;  %879 = vmatprep.subr.mxu1 %v302_v39 }
  0x41   : > { %847 = vmatpush3.msra.mxu0 %v253_v40  ;;  %880 = vmatpush3.msra.mxu1 %v286_v41 }
  0x42   : > { %848 = vmatprep.subr.mxu0 %v268_v42  ;;  %881 = vmatprep.subr.mxu1 %v301_v43 }
  0x43   : > { %849 = vmatpush3.msra.mxu0 %v252_v44  ;;  %882 = vmatpush3.msra.mxu1 %v285_v45 }
  0x44   : > { %850 = vmatprep.subr.mxu0 %v267_v46  ;;  %883 = vmatprep.subr.mxu1 %v300_v47 }
  0x45   : > { %851 = vmatpush3.msra.mxu0 %v251_v48  ;;  %884 = vmatpush3.msra.mxu1 %v284_v49 }
  0x46   : > { %852 = vmatprep.subr.mxu0 %v266_v50  ;;  %885 = vmatprep.subr.mxu1 %v299_v51 }
  0x47   : > { %853 = vmatpush3.msra.mxu0 %v250_v52  ;;  %886 = vmatpush3.msra.mxu1 %v283_v53 }
  0x48   : > { %854 = vmatprep.subr.mxu0 %v265_v54  ;;  %887 = vmatprep.subr.mxu1 %v298_v55 }
  0x49   : > { %855 = vmatpush3.msra.mxu0 %v249_v56  ;;  %888 = vmatpush3.msra.mxu1 %v282_v57 }
  0x4a   : > { %856 = vmatprep.subr.mxu0 %v264_v58  ;;  %889 = vmatprep.subr.mxu1 %v297_v59 }
  0x4b   : > { %857 = vmatpush3.msra.mxu0 %v248_v60  ;;  %890 = vmatpush3.msra.mxu1 %v281_v61 }
  0x4c   : > { %858 = vmatprep.subr.mxu0 %v263_v62  ;;  %891 = vmatprep.subr.mxu1 %v296_v63 }
  0x4d   : > { %859 = vmatpush3.msra.mxu0 %v247_v0  ;;  %538 = vmatprep.mubr.f32.mxu0 %v752_v1 }
  0x4e   : > { %892 = vmatpush3.msra.mxu1 %v280_v2  ;;  %539 = vmatmul.mubr.f32.vlgmr.msra.gmra.mxu0 %v751_v3 }
  0x4f   : > { %893 = vmatprep.subr.mxu1 %v295_v4  ;;  %915 = vmatprep.subr.mxu0 %v969_v9 }
  0x50   : > { %894 = vmatpush3.msra.mxu1 %v279_v5  ;;  %608 = vmatprep.mubr.f32.mxu1 %v753_v6 }
  0x51   : > { %916 = vmatpush3.msra.mxu0 %v326_v7  ;;  %609 = vmatmul.mubr.f32.vlgmr.msra.gmra.mxu1 %v180_v8 }
  0x52   : > { %917 = vmatprep.subr.mxu0 %v969_v9  ;;  %947 = vmatprep.mubr.msk.f32.mxu0 %vm970_vm0, %v969_v9 }
  0x53   : > { %918 = vmatpush3.msra.mxu0 %v325_v10 }
  0x54   : > { %919 = vmatprep.subr.mxu0 %v969_v9 }
  0x55   : > { %920 = vmatpush3.msra.mxu0 %v324_v11 }
  0x56   : > { %921 = vmatprep.subr.mxu0 %v969_v9 }
  0x57   : > { %922 = vmatpush3.msra.mxu0 %v323_v12 }
  0x58   : > { %923 = vmatprep.subr.mxu0 %v969_v9 }
  0x59   : > { %924 = vmatpush3.msra.mxu0 %v322_v13 }
  0x5a   : > { %925 = vmatprep.subr.mxu0 %v969_v9 }
  0x5b   : > { %926 = vmatpush3.msra.mxu0 %v321_v14 }
  0x5c   : > { %927 = vmatprep.subr.mxu0 %v969_v9 }
  0x5d   : > { %928 = vmatpush3.msra.mxu0 %v320_v15 }
  0x5e   : > { %929 = vmatprep.subr.mxu0 %v969_v9 }
  0x5f   : > { %930 = vmatpush3.msra.mxu0 %v319_v16 }
  0x60   : > { %931 = vmatprep.subr.mxu0 %v969_v9 }
  0x61   : > { %932 = vmatpush3.msra.mxu0 %v318_v17 }
  0x62   : > { %933 = vmatprep.subr.mxu0 %v969_v9 }
  0x63   : > { %934 = vmatpush3.msra.mxu0 %v317_v18 }
  0x64   : > { %935 = vmatprep.subr.mxu0 %v969_v9 }
  0x65   : > { %936 = vmatpush3.msra.mxu0 %v316_v19 }
  0x66   : > { %937 = vmatprep.subr.mxu0 %v969_v9 }
  0x67   : > { %938 = vmatpush3.msra.mxu0 %v315_v20 }
  0x68   : > { %939 = vmatprep.subr.mxu0 %v969_v9 }
  0x69   : > { %940 = vmatpush3.msra.mxu0 %v314_v21 }
  0x6a   : > { %941 = vmatprep.subr.mxu0 %v969_v9 }
  0x6b   : > { %942 = vmatpush3.msra.mxu0 %v313_v22 }
  0x6c   : > { %943 = vmatprep.subr.mxu0 %v969_v9 }
  0x6d   : > { %944 = vmatpush3.msra.mxu0 %v312_v23 }
  0x6e   : > { %945 = vmatprep.subr.mxu0 %v969_v9 }
  0x6f   : > { %946 = vmatpush3.msra.mxu0 %v311_v24 }
  0x70   : > { %948 = vmatmul.mubr.f32.vlgmr.msra.gmra.mxu0 %v754_v25 }
  0xec   : > { %v790_v26 = vpop.f32.mrf.mxu0 }
  0xee   : > { %v791_v27 = vpop.f32.mrf.mxu0 }
  0xef   : > { %v825_v28 = vpop.f32.mrf.mxu1  ;;  %v792_v30 = vadd.f32 %v791_v27, %v790_v26 }
  0xf1   : > { %v826_v32 = vpop.f32.mrf.mxu1  ;;  %v401_v35 = vadd.f32 %v792_v30, %v755_v31 }
  0xf2   : > { %v827_v36 = vadd.f32 %v826_v32, %v825_v28 }
  0xf4   : > { %v471_v39 = vadd.f32 %v827_v36, %v401_v35 }
 0x10e   : > { %v860_v29 = vpop.f32.mrf.mxu0 }
 0x110   : > { %v861_v33 = vpop.f32.mrf.mxu0 }
 0x111   : > { %v895_v34 = vpop.f32.mrf.mxu1  ;;  %v862_v37 = vadd.f32 %v861_v33, %v860_v29 }
 0x113   : > { %v896_v38 = vpop.f32.mrf.mxu1  ;;  %v541_v40 = vadd.f32 %v862_v37, %v471_v39 }
 0x114   : > { %v897_v41 = vadd.f32 %v896_v38, %v895_v34 }
 0x116   : > { %v611_v42 = vadd.f32 %v897_v41, %v541_v40 }
 0x130   : > { %v680_v43 = vpop.f32.mrf.mxu0 }
 0x131   : > { %v681_v44 = vadd.f32 %v680_v43, %v611_v42 }
 0x132   : > { %v949_v45 = vpop.f32.mrf.mxu0 }
 0x133   : > { %vm684_vm1 = vcmp.ge.f32.partialorder %v681_v44, 0.0  ;;  %v685_v46 = vmul.f32 0.01, %v681_v44 }
 0x135   : > { %v686_v47 = vsel %vm684_vm1, %v681_v44, %v685_v46 }
 0x136   : > { %687 = vst [vmem:[%s168_s18] sm:$0xf] %v686_v47 }
 0x137 PF: > { %s13_s12 = sadd.s32 1, %s967_s12  }
 0x138   : > { %p10_p4 = scmp.ge.s32.totalorder %s13_s12, 4  }
 0x13a   :  { %12 = sbr.rel (!%p10_p4) target bundleno = 1 (0x1), region = 67 }

// kernel: gradual_cnn_block.7
= control target key start
LH: loop header
LB: loop body
LE: loop exit
PB: predicated region body
PF: predicated region fallthrough
CT: control target
= control target key end

     0   :  { %8 = vsyncpa [#allocation3], 0  ;;  %s1628_s0 = inlined_call_operand.vmem [shape: f32[2,6,2,128], index: 0, kind: input, shape index: {}]   ;;  %s1629_s1 = inlined_call_operand.vmem [shape: f32[1152,128], index: 1, kind: input, shape index: {}]   ;;  %s1630_s2 = inlined_call_operand.vmem [shape: f32[1,128], index: 2, kind: input, shape index: {}]   ;;  %s1631_s3 = inlined_call_operand.hbm [shape: f32[2,1,128], index: 3, kind: output, shape index: {}]  }
   0x1   :  { %10 = vsyncpa [#allocation3 + $0x1], 0  ;;  %s1084_s12 = smov 0   ;;  %s1086_s13 = smov 0  }
   0x2   :  { %s1088_s14 = smov 0   ;;  %s1090_s15 = smov 0  }
   0x3 LB: > { %s1105_s16 = sadd.s32 4294967295, %s1059_s15   ;;  %s750_s17 = sadd.s32 4294967294, %s1059_s15   ;;  %s1059_s15 = sphi %s1090_s15, %s1637_s15   ;;  %s1055_s14 = sphi %s1088_s14, %s1636_s14   ;;  %s1051_s13 = sphi %s1086_s13, %s1635_s13   ;;  %s1047_s12 = sphi %s1084_s12, %s1634_s12  }
   0x4   : > { %s1109_s18 = sadd.s32 1, %s1059_s15   ;;  %s91_s19 = sadd.s32 1, %s1055_s14 }
   0x5   : > { %s88_s20 = ssub.s32 %s1059_s15, %s1109_s18  ;;  %p101_p0 = scmp.ne.s32.totalorder %s1055_s14, %s1051_s13 }
   0x6   : > { %p89_p1 = scmp.eq.s32.totalorder %s88_s20, 0  ;;  %p102_p2 = scmp.eq.s32.totalorder %s1105_s16, 1 }
   0x7   : > { %p107_p3 = scmp.ne.s32.totalorder %s1051_s13, %s1047_s12  ;;  %p108_p4 = scmp.eq.s32.totalorder %s750_s17, 1 }
   0x8   : > { %s1120_s21 = scalar_select %p89_p1, %s1055_s14, %s91_s19  }
   0x9   : > { %p1122_p5 = por %p102_p2, %p101_p0  ;;  %p1126_p6 = por %p108_p4, %p107_p3 }
   0xa   : > { %p753_p7 = scmp.ge.s32.totalorder %s1059_s15, 1  ;;  %p140_p8 = scmp.lt.s32.totalorder %s1059_s15, 3 }
   0xc   : > { %p141_p9 = pnand %p753_p7, %p140_p8 }
   0xd   : > { %p163_p10 = scmp.lt.s32.totalorder (!%p141_p9), %s1105_s16, 1  ;;  %s762_s20 = sshll.u32 (!%p141_p9), %s1105_s16, 4 }
   0xe   : > { %144 = sbr.rel (%p141_p9) target bundleno = 331 (0x14b), region = 32  ;;  %s1593_s28 = scalar_lea.hbm (!%p141_p9), %s1631_s3, %s762_s20 }
  0x13   : > { %v213_v0 = vld [vmem:[%s1629_s1 + $0xf8] sm:$0xff]  ;;  %v212_v2 = vld [vmem:[%s1629_s1 + $0xf0] sm:$0xff]  ;;  %v211_v6 = vld [vmem:[%s1629_s1 + $0xe8] sm:$0xff]  ;;  %s1253_s30 = scalar_select %p163_p10, %s1105_s16, 1  ;;  %vm1062_vm0 = vmmov 0  }
  0x14   : > { %v197_v1 = vld [vmem:[%s1629_s1 + $0x78] sm:$0xff]  ;;  %765 = vmatprep.subr.mxu0 %v213_v0  ;;  %v196_v4 = vld [vmem:[%s1629_s1 + $0x70] sm:$0xff]  ;;  %v195_v8 = vld [vmem:[%s1629_s1 + $0x68] sm:$0xff]  ;;  %s1063_s16 = smov [#allocation2]  }
  0x15   : > { %v245_v3 = vld [vmem:[%s1629_s1 + $0x1f8] sm:$0xff]  ;;  %766 = vmatpush3.msra.mxu0 %v197_v1  ;;  %v244_v7 = vld [vmem:[%s1629_s1 + $0x1f0] sm:$0xff]  ;;  %v243_v10 = vld [vmem:[%s1629_s1 + $0x1e8] sm:$0xff]  ;;  %s957_s29 = smul.u32 12, %s1253_s30  ;;  %s1003_s7 = sshll.u32 %s1063_s16, 4  ;;  %s1004_s7 = int_to_ptr.vmem [resolvable:$false] %s1003_s7 }
  0x16   : > { %v229_v5 = vld [vmem:[%s1629_s1 + $0x178] sm:$0xff]  ;;  %800 = vmatprep.subr.mxu1 %v245_v3  ;;  %767 = vmatprep.subr.mxu0 %v212_v2  ;;  %v228_v9 = vld [vmem:[%s1629_s1 + $0x170] sm:$0xff]  ;;  %v210_v11 = vld [vmem:[%s1629_s1 + $0xe0] sm:$0xff]  ;;  %s1005_s8 = scalar_lea.vmem %s1004_s7, 32 }
  0x17   : > { %801 = vmatpush3.msra.mxu1 %v229_v5  ;;  %768 = vmatpush3.msra.mxu0 %v196_v4  ;;  %v227_v12 = vld [vmem:[%s1629_s1 + $0x168] sm:$0xff]  ;;  %v194_v13 = vld [vmem:[%s1629_s1 + $0x60] sm:$0xff]  ;;  %v209_v15 = vld [vmem:[%s1629_s1 + $0xd8] sm:$0xff]  ;;  %s1307_s5 = scalar_lea.vmem %s1628_s0, %s957_s29 }
  0x18   : > { %802 = vmatprep.subr.mxu1 %v244_v7  ;;  %769 = vmatprep.subr.mxu0 %v211_v6  ;;  %v242_v14 = vld [vmem:[%s1629_s1 + $0x1e0] sm:$0xff]  ;;  %v193_v17 = vld [vmem:[%s1629_s1 + $0x58] sm:$0xff]  ;;  %v208_v19 = vld [vmem:[%s1629_s1 + $0xd0] sm:$0xff] }
  0x19   : > { %803 = vmatpush3.msra.mxu1 %v228_v9  ;;  %770 = vmatpush3.msra.mxu0 %v195_v8  ;;  %v226_v16 = vld [vmem:[%s1629_s1 + $0x160] sm:$0xff]  ;;  %v241_v18 = vld [vmem:[%s1629_s1 + $0x1d8] sm:$0xff]  ;;  %v192_v21 = vld [vmem:[%s1629_s1 + $0x50] sm:$0xff] }
  0x1a   : > { %804 = vmatprep.subr.mxu1 %v243_v10  ;;  %771 = vmatprep.subr.mxu0 %v210_v11  ;;  %v225_v20 = vld [vmem:[%s1629_s1 + $0x158] sm:$0xff]  ;;  %v240_v22 = vld [vmem:[%s1629_s1 + $0x1d0] sm:$0xff]  ;;  %v207_v23 = vld [vmem:[%s1629_s1 + $0xc8] sm:$0xff] }
  0x1b   : > { %805 = vmatpush3.msra.mxu1 %v227_v12  ;;  %772 = vmatpush3.msra.mxu0 %v194_v13  ;;  %v224_v24 = vld [vmem:[%s1629_s1 + $0x150] sm:$0xff]  ;;  %v191_v25 = vld [vmem:[%s1629_s1 + $0x48] sm:$0xff]  ;;  %v206_v27 = vld [vmem:[%s1629_s1 + $0xc0] sm:$0xff] }
  0x1c   : > { %806 = vmatprep.subr.mxu1 %v242_v14  ;;  %773 = vmatprep.subr.mxu0 %v209_v15  ;;  %v239_v26 = vld [vmem:[%s1629_s1 + $0x1c8] sm:$0xff]  ;;  %v190_v29 = vld [vmem:[%s1629_s1 + $0x40] sm:$0xff]  ;;  %v205_v31 = vld [vmem:[%s1629_s1 + $0xb8] sm:$0xff] }
  0x1d   : > { %807 = vmatpush3.msra.mxu1 %v226_v16  ;;  %774 = vmatpush3.msra.mxu0 %v193_v17  ;;  %v223_v28 = vld [vmem:[%s1629_s1 + $0x148] sm:$0xff]  ;;  %v238_v30 = vld [vmem:[%s1629_s1 + $0x1c0] sm:$0xff]  ;;  %v189_v33 = vld [vmem:[%s1629_s1 + $0x38] sm:$0xff] }
  0x1e   : > { %808 = vmatprep.subr.mxu1 %v241_v18  ;;  %775 = vmatprep.subr.mxu0 %v208_v19  ;;  %v222_v32 = vld [vmem:[%s1629_s1 + $0x140] sm:$0xff]  ;;  %v237_v34 = vld [vmem:[%s1629_s1 + $0x1b8] sm:$0xff]  ;;  %v204_v35 = vld [vmem:[%s1629_s1 + $0xb0] sm:$0xff] }
  0x1f   : > { %809 = vmatpush3.msra.mxu1 %v225_v20  ;;  %776 = vmatpush3.msra.mxu0 %v192_v21  ;;  %v221_v36 = vld [vmem:[%s1629_s1 + $0x138] sm:$0xff]  ;;  %v188_v37 = vld [vmem:[%s1629_s1 + $0x30] sm:$0xff]  ;;  %v203_v39 = vld [vmem:[%s1629_s1 + $0xa8] sm:$0xff] }
  0x20   : > { %810 = vmatprep.subr.mxu1 %v240_v22  ;;  %777 = vmatprep.subr.mxu0 %v207_v23  ;;  %v236_v38 = vld [vmem:[%s1629_s1 + $0x1b0] sm:$0xff]  ;;  %v187_v41 = vld [vmem:[%s1629_s1 + $0x28] sm:$0xff]  ;;  %v202_v43 = vld [vmem:[%s1629_s1 + $0xa0] sm:$0xff] }
  0x21   : > { %811 = vmatpush3.msra.mxu1 %v224_v24  ;;  %778 = vmatpush3.msra.mxu0 %v191_v25  ;;  %v220_v40 = vld [vmem:[%s1629_s1 + $0x130] sm:$0xff]  ;;  %v235_v42 = vld [vmem:[%s1629_s1 + $0x1a8] sm:$0xff]  ;;  %v186_v45 = vld [vmem:[%s1629_s1 + $0x20] sm:$0xff] }
  0x22   : > { %812 = vmatprep.subr.mxu1 %v239_v26  ;;  %779 = vmatprep.subr.mxu0 %v206_v27  ;;  %v219_v44 = vld [vmem:[%s1629_s1 + $0x128] sm:$0xff]  ;;  %v234_v46 = vld [vmem:[%s1629_s1 + $0x1a0] sm:$0xff]  ;;  %v201_v47 = vld [vmem:[%s1629_s1 + $0x98] sm:$0xff] }
  0x23   : > { %813 = vmatpush3.msra.mxu1 %v223_v28  ;;  %780 = vmatpush3.msra.mxu0 %v190_v29  ;;  %v218_v48 = vld [vmem:[%s1629_s1 + $0x120] sm:$0xff]  ;;  %v185_v49 = vld [vmem:[%s1629_s1 + $0x18] sm:$0xff]  ;;  %v200_v51 = vld [vmem:[%s1629_s1 + $0x90] sm:$0xff] }
  0x24   : > { %814 = vmatprep.subr.mxu1 %v238_v30  ;;  %781 = vmatprep.subr.mxu0 %v205_v31  ;;  %v233_v50 = vld [vmem:[%s1629_s1 + $0x198] sm:$0xff]  ;;  %v184_v53 = vld [vmem:[%s1629_s1 + $0x10] sm:$0xff]  ;;  %v199_v55 = vld [vmem:[%s1629_s1 + $0x88] sm:$0xff] }
  0x25   : > { %815 = vmatpush3.msra.mxu1 %v222_v32  ;;  %782 = vmatpush3.msra.mxu0 %v189_v33  ;;  %v217_v52 = vld [vmem:[%s1629_s1 + $0x118] sm:$0xff]  ;;  %v232_v54 = vld [vmem:[%s1629_s1 + $0x190] sm:$0xff]  ;;  %v183_v57 = vld [vmem:[%s1629_s1 + $0x8] sm:$0xff] }
  0x26   : > { %816 = vmatprep.subr.mxu1 %v237_v34  ;;  %783 = vmatprep.subr.mxu0 %v204_v35  ;;  %v216_v56 = vld [vmem:[%s1629_s1 + $0x110] sm:$0xff]  ;;  %v231_v58 = vld [vmem:[%s1629_s1 + $0x188] sm:$0xff]  ;;  %v198_v59 = vld [vmem:[%s1629_s1 + $0x80] sm:$0xff] }
  0x27   : > { %817 = vmatpush3.msra.mxu1 %v221_v36  ;;  %784 = vmatpush3.msra.mxu0 %v188_v37  ;;  %v755_v60 = vld [vmem:[%s1307_s5 + $0x2] sm:$0x1]  ;;  %v215_v62 = vld [vmem:[%s1629_s1 + $0x108] sm:$0xff]  ;;  %v168_v63 = vld [vmem:[%s1307_s5] sm:$0x1] }
  0x28   : > { %818 = vmatprep.subr.mxu1 %v236_v38  ;;  %785 = vmatprep.subr.mxu0 %v203_v39  ;;  %v182_v61 = vld [vmem:[%s1629_s1] sm:$0xff]  ;;  %v277_v1 = vld [vmem:[%s1629_s1 + $0x2f8] sm:$0xff]  ;;  %v276_v6 = vld [vmem:[%s1629_s1 + $0x2f0] sm:$0xff] }
  0x29   : > { %819 = vmatpush3.msra.mxu1 %v220_v40  ;;  %786 = vmatpush3.msra.mxu0 %v187_v41  ;;  %v230_v0 = vld [vmem:[%s1629_s1 + $0x180] sm:$0xff]  ;;  %v261_v4 = vld [vmem:[%s1629_s1 + $0x278] sm:$0xff]  ;;  %v260_v8 = vld [vmem:[%s1629_s1 + $0x270] sm:$0xff] }
  0x2a   : > { %820 = vmatprep.subr.mxu1 %v235_v42  ;;  %787 = vmatprep.subr.mxu0 %v202_v43  ;;  %v214_v2 = vld [vmem:[%s1629_s1 + $0x100] sm:$0xff]  ;;  %v309_v7 = vld [vmem:[%s1629_s1 + $0x3f8] sm:$0xff]  ;;  %v275_v10 = vld [vmem:[%s1629_s1 + $0x2e8] sm:$0xff] }
  0x2b   : > { %821 = vmatpush3.msra.mxu1 %v219_v44  ;;  %788 = vmatpush3.msra.mxu0 %v186_v45  ;;  %v757_v3 = vld [vmem:[%s1307_s5 + $0x6] sm:$0x1]  ;;  %v756_v5 = vld [vmem:[%s1307_s5 + $0x4] sm:$0x1]  ;;  %v293_v9 = vld [vmem:[%s1629_s1 + $0x378] sm:$0xff] }
  0x2c   : > { %822 = vmatprep.subr.mxu1 %v234_v46  ;;  %789 = vmatprep.subr.mxu0 %v201_v47  ;;  %v308_v11 = vld [vmem:[%s1629_s1 + $0x3f0] sm:$0xff]  ;;  %v259_v12 = vld [vmem:[%s1629_s1 + $0x268] sm:$0xff]  ;;  %v274_v14 = vld [vmem:[%s1629_s1 + $0x2e0] sm:$0xff] }
  0x2d   : > { %823 = vmatpush3.msra.mxu1 %v218_v48  ;;  %790 = vmatpush3.msra.mxu0 %v185_v49  ;;  %v292_v13 = vld [vmem:[%s1629_s1 + $0x370] sm:$0xff]  ;;  %v307_v15 = vld [vmem:[%s1629_s1 + $0x3e8] sm:$0xff]  ;;  %v258_v16 = vld [vmem:[%s1629_s1 + $0x260] sm:$0xff] }
  0x2e   : > { %824 = vmatprep.subr.mxu1 %v233_v50  ;;  %791 = vmatprep.subr.mxu0 %v200_v51  ;;  %v291_v17 = vld [vmem:[%s1629_s1 + $0x368] sm:$0xff]  ;;  %v273_v18 = vld [vmem:[%s1629_s1 + $0x2d8] sm:$0xff]  ;;  %v306_v19 = vld [vmem:[%s1629_s1 + $0x3e0] sm:$0xff] }
  0x2f   : > { %825 = vmatpush3.msra.mxu1 %v217_v52  ;;  %792 = vmatpush3.msra.mxu0 %v184_v53  ;;  %v257_v20 = vld [vmem:[%s1629_s1 + $0x258] sm:$0xff]  ;;  %v290_v21 = vld [vmem:[%s1629_s1 + $0x360] sm:$0xff]  ;;  %v272_v22 = vld [vmem:[%s1629_s1 + $0x2d0] sm:$0xff] }
  0x30   : > { %826 = vmatprep.subr.mxu1 %v232_v54  ;;  %793 = vmatprep.subr.mxu0 %v199_v55  ;;  %v305_v23 = vld [vmem:[%s1629_s1 + $0x3d8] sm:$0xff]  ;;  %v256_v24 = vld [vmem:[%s1629_s1 + $0x250] sm:$0xff]  ;;  %v271_v26 = vld [vmem:[%s1629_s1 + $0x2c8] sm:$0xff] }
  0x31   : > { %827 = vmatpush3.msra.mxu1 %v216_v56  ;;  %794 = vmatpush3.msra.mxu0 %v183_v57  ;;  %v289_v25 = vld [vmem:[%s1629_s1 + $0x358] sm:$0xff]  ;;  %v304_v27 = vld [vmem:[%s1629_s1 + $0x3d0] sm:$0xff]  ;;  %v255_v28 = vld [vmem:[%s1629_s1 + $0x248] sm:$0xff] }
  0x32   : > { %828 = vmatprep.subr.mxu1 %v231_v58  ;;  %795 = vmatprep.subr.mxu0 %v198_v59  ;;  %v288_v29 = vld [vmem:[%s1629_s1 + $0x350] sm:$0xff]  ;;  %v270_v30 = vld [vmem:[%s1629_s1 + $0x2c0] sm:$0xff]  ;;  %v303_v31 = vld [vmem:[%s1629_s1 + $0x3c8] sm:$0xff] }
  0x33   : > { %391 = vmatprep.mubr.f32.mxu0 %v755_v60  ;;  %796 = vmatpush3.msra.mxu0 %v182_v61  ;;  %v254_v32 = vld [vmem:[%s1629_s1 + $0x240] sm:$0xff]  ;;  %v287_v33 = vld [vmem:[%s1629_s1 + $0x348] sm:$0xff]  ;;  %v269_v34 = vld [vmem:[%s1629_s1 + $0x2b8] sm:$0xff] }
  0x34   : > { %829 = vmatpush3.msra.mxu1 %v215_v62  ;;  %392 = vmatmul.mubr.f32.vlgmr.msra.gmra.mxu0 %v168_v63  ;;  %v302_v35 = vld [vmem:[%s1629_s1 + $0x3c0] sm:$0xff]  ;;  %v253_v36 = vld [vmem:[%s1629_s1 + $0x238] sm:$0xff]  ;;  %v268_v38 = vld [vmem:[%s1629_s1 + $0x2b0] sm:$0xff] }
  0x35   : > { %830 = vmatprep.subr.mxu1 %v230_v0  ;;  %835 = vmatprep.subr.mxu0 %v277_v1  ;;  %v286_v37 = vld [vmem:[%s1629_s1 + $0x340] sm:$0xff]  ;;  %v301_v39 = vld [vmem:[%s1629_s1 + $0x3b8] sm:$0xff]  ;;  %v252_v40 = vld [vmem:[%s1629_s1 + $0x230] sm:$0xff] }
  0x36   : > { %831 = vmatpush3.msra.mxu1 %v214_v2  ;;  %461 = vmatprep.mubr.f32.mxu1 %v757_v3  ;;  %v285_v41 = vld [vmem:[%s1629_s1 + $0x338] sm:$0xff]  ;;  %v267_v42 = vld [vmem:[%s1629_s1 + $0x2a8] sm:$0xff]  ;;  %v300_v43 = vld [vmem:[%s1629_s1 + $0x3b0] sm:$0xff] }
  0x37   : > { %836 = vmatpush3.msra.mxu0 %v261_v4  ;;  %462 = vmatmul.mubr.f32.vlgmr.msra.gmra.mxu1 %v756_v5  ;;  %v251_v44 = vld [vmem:[%s1629_s1 + $0x228] sm:$0xff]  ;;  %v284_v45 = vld [vmem:[%s1629_s1 + $0x330] sm:$0xff]  ;;  %v266_v46 = vld [vmem:[%s1629_s1 + $0x2a0] sm:$0xff] }
  0x38   : > { %837 = vmatprep.subr.mxu0 %v276_v6  ;;  %870 = vmatprep.subr.mxu1 %v309_v7  ;;  %v299_v47 = vld [vmem:[%s1629_s1 + $0x3a8] sm:$0xff]  ;;  %v250_v48 = vld [vmem:[%s1629_s1 + $0x220] sm:$0xff]  ;;  %v265_v50 = vld [vmem:[%s1629_s1 + $0x298] sm:$0xff] }
  0x39   : > { %838 = vmatpush3.msra.mxu0 %v260_v8  ;;  %871 = vmatpush3.msra.mxu1 %v293_v9  ;;  %v283_v49 = vld [vmem:[%s1629_s1 + $0x328] sm:$0xff]  ;;  %v298_v51 = vld [vmem:[%s1629_s1 + $0x3a0] sm:$0xff]  ;;  %v249_v52 = vld [vmem:[%s1629_s1 + $0x218] sm:$0xff]  ;;  %v1061_v9 = vmov 0.0  }
  0x3a   : > { %839 = vmatprep.subr.mxu0 %v275_v10  ;;  %872 = vmatprep.subr.mxu1 %v308_v11  ;;  %v282_v53 = vld [vmem:[%s1629_s1 + $0x320] sm:$0xff]  ;;  %v264_v54 = vld [vmem:[%s1629_s1 + $0x290] sm:$0xff]  ;;  %v297_v55 = vld [vmem:[%s1629_s1 + $0x398] sm:$0xff] }
  0x3b   : > { %840 = vmatpush3.msra.mxu0 %v259_v12  ;;  %873 = vmatpush3.msra.mxu1 %v292_v13  ;;  %v248_v56 = vld [vmem:[%s1629_s1 + $0x210] sm:$0xff]  ;;  %v281_v57 = vld [vmem:[%s1629_s1 + $0x318] sm:$0xff]  ;;  %v263_v58 = vld [vmem:[%s1629_s1 + $0x288] sm:$0xff] }
  0x3c   : > { %841 = vmatprep.subr.mxu0 %v274_v14  ;;  %874 = vmatprep.subr.mxu1 %v307_v15  ;;  %v296_v59 = vld [vmem:[%s1629_s1 + $0x390] sm:$0xff]  ;;  %v247_v60 = vld [vmem:[%s1629_s1 + $0x208] sm:$0xff]  ;;  %v262_v62 = vld [vmem:[%s1629_s1 + $0x280] sm:$0xff] }
  0x3d   : > { %842 = vmatpush3.msra.mxu0 %v258_v16  ;;  %875 = vmatpush3.msra.mxu1 %v291_v17  ;;  %v280_v61 = vld [vmem:[%s1629_s1 + $0x310] sm:$0xff]  ;;  %v295_v63 = vld [vmem:[%s1629_s1 + $0x388] sm:$0xff]  ;;  %v246_v0 = vld [vmem:[%s1629_s1 + $0x200] sm:$0xff] }
  0x3e   : > { %843 = vmatprep.subr.mxu0 %v273_v18  ;;  %876 = vmatprep.subr.mxu1 %v306_v19  ;;  %v759_v1 = vld [vmem:[%s1307_s5 + $0xa] sm:$0x1]  ;;  %v758_v3 = vld [vmem:[%s1307_s5 + $0x8] sm:$0x1]  ;;  %v294_v4 = vld [vmem:[%s1629_s1 + $0x380] sm:$0xff] }
  0x3f   : > { %844 = vmatpush3.msra.mxu0 %v257_v20  ;;  %877 = vmatpush3.msra.mxu1 %v290_v21  ;;  %v279_v2 = vld [vmem:[%s1629_s1 + $0x308] sm:$0xff]  ;;  %v278_v5 = vld [vmem:[%s1629_s1 + $0x300] sm:$0xff]  ;;  %v325_v7 = vld [vmem:[%s1629_s1 + $0x478] sm:$0xff] }
  0x40   : > { %845 = vmatprep.subr.mxu0 %v272_v22  ;;  %878 = vmatprep.subr.mxu1 %v305_v23  ;;  %v760_v6 = vld [vmem:[%s1307_s5 + $0x3] sm:$0x1]  ;;  %v179_v8 = vld [vmem:[%s1307_s5 + $0x1] sm:$0x1]  ;;  %v324_v10 = vld [vmem:[%s1629_s1 + $0x470] sm:$0xff] }
  0x41   : > { %846 = vmatpush3.msra.mxu0 %v256_v24  ;;  %879 = vmatpush3.msra.mxu1 %v289_v25  ;;  %v323_v11 = vld [vmem:[%s1629_s1 + $0x468] sm:$0xff]  ;;  %v322_v12 = vld [vmem:[%s1629_s1 + $0x460] sm:$0xff]  ;;  %v321_v13 = vld [vmem:[%s1629_s1 + $0x458] sm:$0xff] }
  0x42   : > { %847 = vmatprep.subr.mxu0 %v271_v26  ;;  %880 = vmatprep.subr.mxu1 %v304_v27  ;;  %v320_v14 = vld [vmem:[%s1629_s1 + $0x450] sm:$0xff]  ;;  %v319_v15 = vld [vmem:[%s1629_s1 + $0x448] sm:$0xff]  ;;  %v318_v16 = vld [vmem:[%s1629_s1 + $0x440] sm:$0xff] }
  0x43   : > { %848 = vmatpush3.msra.mxu0 %v255_v28  ;;  %881 = vmatpush3.msra.mxu1 %v288_v29  ;;  %v317_v17 = vld [vmem:[%s1629_s1 + $0x438] sm:$0xff]  ;;  %v316_v18 = vld [vmem:[%s1629_s1 + $0x430] sm:$0xff]  ;;  %v315_v19 = vld [vmem:[%s1629_s1 + $0x428] sm:$0xff] }
  0x44   : > { %849 = vmatprep.subr.mxu0 %v270_v30  ;;  %882 = vmatprep.subr.mxu1 %v303_v31  ;;  %v314_v20 = vld [vmem:[%s1629_s1 + $0x420] sm:$0xff]  ;;  %v313_v21 = vld [vmem:[%s1629_s1 + $0x418] sm:$0xff]  ;;  %v312_v22 = vld [vmem:[%s1629_s1 + $0x410] sm:$0xff] }
  0x45   : > { %850 = vmatpush3.msra.mxu0 %v254_v32  ;;  %883 = vmatpush3.msra.mxu1 %v287_v33  ;;  %v311_v23 = vld [vmem:[%s1629_s1 + $0x408] sm:$0xff]  ;;  %v310_v24 = vld [vmem:[%s1629_s1 + $0x400] sm:$0xff] }
  0x46   : > { %851 = vmatprep.subr.mxu0 %v269_v34  ;;  %884 = vmatprep.subr.mxu1 %v302_v35  ;;  %v761_v25 = vld [vmem:[%s1307_s5 + $0x5] sm:$0x1]  ;;  %v326_v31 = vld [vmem:[%s1630_s2] sm:$0x1]  ;;  %s161_s5 = sand.u32 1, %s1051_s13  }
  0x47   : > { %852 = vmatpush3.msra.mxu0 %v253_v36  ;;  %885 = vmatpush3.msra.mxu1 %v286_v37  ;;  %s162_s24 = scalar_lea.vmem [#allocation2], %s161_s5  ;;  %s683_s4 = scalar_lea.sflag [#allocation3], %s161_s5 }
  0x48   : > { %853 = vmatprep.subr.mxu0 %v268_v38  ;;  %886 = vmatprep.subr.mxu1 %v301_v39  ;;  %s695_s25 = sshll.u32 %s162_s24, 4  ;;  %s696_s25 = int_to_ptr.vmem [resolvable:$true] %s695_s25 }
  0x49   : > { %854 = vmatpush3.msra.mxu0 %v252_v40  ;;  %887 = vmatpush3.msra.mxu1 %v285_v41  ;;  %s999_s6 = scalar_lea.vmem %s696_s25, 16  ;;  %p1006_p0 = scmp.lt.s32.totalorder %s696_s25, %s1004_s7 }
  0x4a   : > { %855 = vmatprep.subr.mxu0 %v267_v42  ;;  %888 = vmatprep.subr.mxu1 %v300_v43  ;;  %p1000_p11 = scmp.ne.s32.totalorder %s696_s25, %s999_s6  ;;  %p1007_p1 = scmp.lt.s32.totalorder %s1005_s8, %s999_s6 }
  0x4b   : > { %856 = vmatpush3.msra.mxu0 %v251_v44  ;;  %889 = vmatpush3.msra.mxu1 %v284_v45 }
  0x4c   : > { %857 = vmatprep.subr.mxu0 %v266_v46  ;;  %890 = vmatprep.subr.mxu1 %v299_v47  ;;  %p1001_p12 = pnand %p1000_p11, %p1122_p5  ;;  %p1008_p2 = por %p1007_p1, %p1006_p0 }
  0x4d   : > { %858 = vmatpush3.msra.mxu0 %v250_v48  ;;  %891 = vmatpush3.msra.mxu1 %v283_v49 }
  0x4e   : > { %859 = vmatprep.subr.mxu0 %v265_v50  ;;  %892 = vmatprep.subr.mxu1 %v298_v51  ;;  %p1002_p13 = pneg %p1001_p12 }
  0x4f   : > { %860 = vmatpush3.msra.mxu0 %v249_v52  ;;  %893 = vmatpush3.msra.mxu1 %v282_v53 }
  0x50   : > { %861 = vmatprep.subr.mxu0 %v264_v54  ;;  %894 = vmatprep.subr.mxu1 %v297_v55  ;;  %p1009_p3 = pnand %p1008_p2, %p1002_p13 }
  0x51   : > { %862 = vmatpush3.msra.mxu0 %v248_v56  ;;  %895 = vmatpush3.msra.mxu1 %v281_v57 }
  0x52   : > { %863 = vmatprep.subr.mxu0 %v263_v58  ;;  %896 = vmatprep.subr.mxu1 %v296_v59 }
  0x53   : > { %864 = vmatpush3.msra.mxu0 %v247_v60  ;;  %897 = vmatpush3.msra.mxu1 %v280_v61 }
  0x54   : > { %865 = vmatprep.subr.mxu0 %v262_v62  ;;  %898 = vmatprep.subr.mxu1 %v295_v63 }
  0x55   : > { %866 = vmatpush3.msra.mxu0 %v246_v0  ;;  %531 = vmatprep.mubr.f32.mxu0 %v759_v1 }
  0x56   : > { %899 = vmatpush3.msra.mxu1 %v279_v2  ;;  %532 = vmatmul.mubr.f32.vlgmr.msra.gmra.mxu0 %v758_v3 }
  0x57   : > { %900 = vmatprep.subr.mxu1 %v294_v4  ;;  %922 = vmatprep.subr.mxu0 %v1061_v9 }
  0x58   : > { %901 = vmatpush3.msra.mxu1 %v278_v5  ;;  %601 = vmatprep.mubr.f32.mxu1 %v760_v6 }
  0x59   : > { %923 = vmatpush3.msra.mxu0 %v325_v7  ;;  %602 = vmatmul.mubr.f32.vlgmr.msra.gmra.mxu1 %v179_v8 }
  0x5a   : > { %924 = vmatprep.subr.mxu0 %v1061_v9  ;;  %954 = vmatprep.mubr.msk.f32.mxu0 %vm1062_vm0, %v1061_v9 }
  0x5b   : > { %925 = vmatpush3.msra.mxu0 %v324_v10 }
  0x5c   : > { %926 = vmatprep.subr.mxu0 %v1061_v9 }
  0x5d   : > { %927 = vmatpush3.msra.mxu0 %v323_v11 }
  0x5e   : > { %928 = vmatprep.subr.mxu0 %v1061_v9 }
  0x5f   : > { %929 = vmatpush3.msra.mxu0 %v322_v12 }
  0x60   : > { %930 = vmatprep.subr.mxu0 %v1061_v9 }
  0x61   : > { %931 = vmatpush3.msra.mxu0 %v321_v13 }
  0x62   : > { %932 = vmatprep.subr.mxu0 %v1061_v9 }
  0x63   : > { %933 = vmatpush3.msra.mxu0 %v320_v14 }
  0x64   : > { %934 = vmatprep.subr.mxu0 %v1061_v9 }
  0x65   : > { %935 = vmatpush3.msra.mxu0 %v319_v15 }
  0x66   : > { %936 = vmatprep.subr.mxu0 %v1061_v9 }
  0x67   : > { %937 = vmatpush3.msra.mxu0 %v318_v16 }
  0x68   : > { %938 = vmatprep.subr.mxu0 %v1061_v9 }
  0x69   : > { %939 = vmatpush3.msra.mxu0 %v317_v17 }
  0x6a   : > { %940 = vmatprep.subr.mxu0 %v1061_v9 }
  0x6b   : > { %941 = vmatpush3.msra.mxu0 %v316_v18 }
  0x6c   : > { %942 = vmatprep.subr.mxu0 %v1061_v9 }
  0x6d   : > { %943 = vmatpush3.msra.mxu0 %v315_v19 }
  0x6e   : > { %944 = vmatprep.subr.mxu0 %v1061_v9 }
  0x6f   : > { %945 = vmatpush3.msra.mxu0 %v314_v20 }
  0x70   : > { %946 = vmatprep.subr.mxu0 %v1061_v9 }
  0x71   : > { %947 = vmatpush3.msra.mxu0 %v313_v21 }
  0x72   : > { %948 = vmatprep.subr.mxu0 %v1061_v9 }
  0x73   : > { %949 = vmatpush3.msra.mxu0 %v312_v22 }
  0x74   : > { %950 = vmatprep.subr.mxu0 %v1061_v9 }
  0x75   : > { %951 = vmatpush3.msra.mxu0 %v311_v23 }
  0x76   : > { %952 = vmatprep.subr.mxu0 %v1061_v9 }
  0x77   : > { %953 = vmatpush3.msra.mxu0 %v310_v24 }
  0x78   : > { %955 = vmatmul.mubr.f32.vlgmr.msra.gmra.mxu0 %v761_v25 }
  0xf4   : > { %v797_v26 = vpop.f32.mrf.mxu0 }
  0xf6   : > { %v798_v27 = vpop.f32.mrf.mxu0 }
  0xf7   : > { %v832_v28 = vpop.f32.mrf.mxu1  ;;  %v799_v30 = vadd.f32 %v798_v27, %v797_v26 }
  0xf9   : > { %v833_v32 = vpop.f32.mrf.mxu1  ;;  %v394_v35 = vadd.f32 %v799_v30, %v326_v31 }
  0xfa   : > { %v834_v36 = vadd.f32 %v833_v32, %v832_v28 }
  0xfc   : > { %v464_v39 = vadd.f32 %v834_v36, %v394_v35 }
 0x116   : > { %v867_v29 = vpop.f32.mrf.mxu0 }
 0x118   : > { %v868_v33 = vpop.f32.mrf.mxu0 }
 0x119   : > { %v902_v34 = vpop.f32.mrf.mxu1  ;;  %v869_v37 = vadd.f32 %v868_v33, %v867_v29 }
 0x11b   : > { %v903_v38 = vpop.f32.mrf.mxu1  ;;  %v534_v40 = vadd.f32 %v869_v37, %v464_v39 }
 0x11c   : > { %v904_v41 = vadd.f32 %v903_v38, %v902_v34 }
 0x11e   : > { %v604_v42 = vadd.f32 %v904_v41, %v534_v40 }
 0x138   : > { %v673_v43 = vpop.f32.mrf.mxu0 }
 0x139   : > { %v674_v44 = vadd.f32 %v673_v43, %v604_v42 }
 0x13a   : > { %v956_v45 = vpop.f32.mrf.mxu0 }
 0x13b   : > { %vm677_vm1 = vcmp.ge.f32.partialorder %v674_v44, 0.0  ;;  %v678_v46 = vmul.f32 0.01, %v674_v44 }
 0x13d   : > { %v679_v47 = vsel %vm677_vm1, %v674_v44, %v678_v46 }
 0x13e   : > { %681 = vst [vmem:[%s162_s24] sm:$0x1] %v679_v47 }
 0x13f   : > { %1012 = shalt.err (!%p1009_p3)
}
 0x140   : > { %s1013_s9 = scalar_lea.hbm %s1593_s28, 16  ;;  %s1017_s29 = scalar_lea.hbm %s1631_s3, 32 }
 0x141   : > { %p1014_p4 = scmp.ne.s32.totalorder %s1593_s28, %s1013_s9  ;;  %p1018_p9 = scmp.lt.s32.totalorder %s1593_s28, %s1631_s3 }
 0x142   : > { %p1019_p10 = scmp.lt.s32.totalorder %s1017_s29, %s1013_s9 }
 0x143   : > { %p1015_p7 = pnand %p1014_p4, %p1122_p5 }
 0x144   : > { %p1020_p11 = por %p1019_p10, %p1018_p9 }
 0x145   : > { %p1016_p8 = pneg %p1015_p7 }
 0x147   : > { %p1021_p12 = pnand %p1020_p11, %p1016_p8 }
 0x149   : > { %1024 = shalt.err (!%p1021_p12)
}
 0x14a   : > { %958 = dma.vmem_to_hbm [thread:$0]  (%p1122_p5), %s696_s25, 16, %s1593_s28, %s683_s4  }
 0x14b PF: > { %p964_p13 = scmp.ge.s32.totalorder %s1059_s15, 2  ;;  %s707_s19 = sand.u32 1, %s1047_s12  }
 0x14c   : > { %s708_s5 = scalar_lea.sflag [#allocation3], %s707_s19 }
 0x14d   : > { %p961_p0 = pnand %p964_p13, %p1126_p6 }
 0x14f   : > { %p962_p1 = pneg %p961_p0 }
 0x151   : > { %1042 = dma.done.wait (%p962_p1), %s708_s5, 16  }
 0x152   : > { %1044 = vsyncadd (%p962_p1), %s708_s5, 4294967280  ;;  %p13_p2 = scmp.ge.s32.totalorder %s1109_s18, 4   ;;  %s1634_s12 = smov %s1051_s13 }
 0x153   : > { %s1635_s13 = smov %s1055_s14  ;;  %s1636_s14 = smov %s1120_s21 }
 0x154   : > { %s1637_s15 = smov %s1109_s18  ;;  %15 = sbr.rel (!%p13_p2) target bundleno = 3 (0x3), region = 72 }
 0x159   :  { %712 = vsyncpa [#allocation3], 1 }
 0x15a   :  { %714 = vsyncpa [#allocation3 + $0x1], 1 }

</bundles_post_ra>
